<compile_context>
chip_gen: v6e
topology: v6e:2x2x1
jax: 0.10.0
libtpu: 0.0.40
codegen_flags: <defaults>
</compile_context>

<pallas_src>
import jax
import jax.numpy as jnp
from jax.experimental import pallas as pl
from jax.experimental.pallas import tpu as pltpu


def _round_up(x, m):
    return ((x + m - 1) // m) * m


def _padded_tile_bytes(rows, cols, itemsize):
    """VMEM footprint of a [rows, cols] tile with lane/sublane padding."""
    sublane = 8 * (4 // max(1, itemsize))     # 8 for 32-bit, 16 for 16-bit
    return _round_up(max(rows, 1), sublane) * _round_up(max(cols, 1), 128) * itemsize


def _mlp_body(x_ref, w_in_ref, w_hid_ref, w_out_ref, o_ref, *,
              n_hidden, use_vpu_input):
    # tcnn computes in half precision: cast activations to bf16 in-kernel.
    xb = x_ref[...].astype(jnp.bfloat16)
    w_in = w_in_ref[...]
    w_out = w_out_ref[...]
    dim_in = xb.shape[1]

    if use_vpu_input:
        # K = dim_in is tiny: a padded-K MXU pass costs nearly as much MXU time
        # as a K=64 hidden layer for ~1-2% of the useful FLOPs.  Do the input
        # layer on the (otherwise idle) VPU as dim_in broadcast multiply-adds,
        # accumulated in f32 (bf16 x bf16 products are exact in f32).
        xf = xb.astype(jnp.float32)
        wf = w_in.astype(jnp.float32)
        h = xf[:, 0:1] * wf[0:1, :]
        for k in range(1, dim_in):
            h = h + xf[:, k:k + 1] * wf[k:k + 1, :]
    else:
        h = jnp.dot(xb, w_in, preferred_element_type=jnp.float32)

    # f32 ReLU then cast: numerically identical to a bf16 ReLU and safe on
    # v5e's f32-only VALU.
    h = jnp.maximum(h, 0.0).astype(jnp.bfloat16)

    # Hidden layers: whole-tile, weight-stationary [tile_n,64]@[64,64] matmuls
    # (one streaming MXU pass of the batch tile per layer).
    for l in range(n_hidden):
        h = jnp.dot(h, w_hid_ref[l], preferred_element_type=jnp.float32)
        h = jnp.maximum(h, 0.0).astype(jnp.bfloat16)

    out = jnp.dot(h, w_out, preferred_element_type=jnp.float32)
    o_ref[...] = out.astype(o_ref.dtype)


def _make_kernel(n_hidden, use_vpu_input):
    if n_hidden > 0:
        def kernel(x_ref, w_in_ref, w_hid_ref, w_out_ref, o_ref):
            _mlp_body(x_ref, w_in_ref, w_hid_ref, w_out_ref, o_ref,
                      n_hidden=n_hidden, use_vpu_input=use_vpu_input)
    else:
        def kernel(x_ref, w_in_ref, w_out_ref, o_ref):
            _mlp_body(x_ref, w_in_ref, None, w_out_ref, o_ref,
                      n_hidden=0, use_vpu_input=use_vpu_input)
    return kernel


def tcnn_network_forward(x, w_in, w_hidden, w_out, *,
                         tile_n=4096, out_dtype=jnp.float32):
    """Fully-fused bias-free MLP forward.

    x:        [N, dim_in]                       (any float dtype; cast to bf16 in-kernel)
    w_in:     [dim_in, n_neurons]
    w_hidden: [n_hidden, n_neurons, n_neurons]  or None / shape (0, H, H)
    w_out:    [n_neurons, dim_out]
    returns:  [N, dim_out] in `out_dtype` (float32 default == tcnn `.float()`)
    """
    N, dim_in = x.shape
    n_neurons = w_in.shape[1]
    dim_out = w_out.shape[1]
    n_hidden = 0 if (w_hidden is None or w_hidden.shape[0] == 0) else w_hidden.shape[0]
    use_vpu_input = dim_in <= 8

    # Weights are tiny; casting them in the wrapper is free.  x is NOT cast here.
    w_in = w_in.astype(jnp.bfloat16)
    w_out = w_out.astype(jnp.bfloat16)
    if n_hidden:
        w_hidden = w_hidden.astype(jnp.bfloat16)

    out_itemsize = jnp.dtype(out_dtype).itemsize
    x_itemsize = jnp.dtype(x.dtype).itemsize

    # ---- generation-aware VMEM budget -----------------------------------------
    try:
        phys_vmem = int(pltpu.get_tpu_info().vmem_capacity_bytes)
    except Exception:
        phys_vmem = 64 * 1024 * 1024          # conservative: v7x per-core VMEM
    vmem_cap = (3 * phys_vmem) // 4           # leave headroom for Mosaic scratch

    def _vmem_estimate(t):
        # Double-buffered operand tiles (lane/sublane-padded) + in-kernel
        # activation temporaries the compiler materializes in VMEM.
        x_b = _padded_tile_bytes(t, dim_in, x_itemsize)
        o_b = _padded_tile_bytes(t, dim_out, out_itemsize)
        w_b = (_padded_tile_bytes(dim_in, n_neurons, 2)
               + n_hidden * _padded_tile_bytes(n_neurons, n_neurons, 2)
               + _padded_tile_bytes(n_neurons, dim_out, 2))
        act_b = (_padded_tile_bytes(t, dim_in, 4)            # f32 x (VPU input layer)
                 + _padded_tile_bytes(t, dim_in, 2)          # bf16 x
                 + 2 * _padded_tile_bytes(t, n_neurons, 4)   # f32 pre-ReLU h (+slack)
                 + _padded_tile_bytes(t, n_neurons, 2)       # bf16 post-ReLU h
                 + _padded_tile_bytes(t, dim_out, 4))        # f32 out before cast
        return 2 * (x_b + o_b + w_b) + act_b

    # ---- batch-tile selection --------------------------------------------------
    # Large tiles amortize the ~0.35 us per-grid-step pipeline overhead.
    tile_n = max(8, _round_up(tile_n, 8))
    tile_n = min(tile_n, _round_up(N, 8))
    # v7x: ensure >= 2 grid steps whenever there is enough work so the
    # "parallel" batch axis shards across both TensorCores (single-TC v5e/v6e
    # pay only one extra ~0.35 us grid step).
    if N >= 1024:
        tile_n = min(tile_n, _round_up((N + 1) // 2, 8))
    # Shrink the tile if the padding-aware estimate would exceed this chip's VMEM.
    while tile_n > 512 and _vmem_estimate(tile_n) > vmem_cap:
        tile_n = max(512, _round_up(tile_n // 2, 8))

    n_pad = _round_up(N, tile_n)
    grid_len = n_pad // tile_n
    if n_pad != N:
        x = jnp.pad(x, ((0, n_pad - N), (0, 0)))

    # ---- cost estimate & compiler params ---------------------------------------
    weight_bytes = int(w_in.nbytes + (w_hidden.nbytes if n_hidden else 0) + w_out.nbytes)
    flops_per_row = 2 * (dim_in * n_neurons
                         + n_hidden * n_neurons * n_neurons
                         + n_neurons * dim_out)
    cost = pl.CostEstimate(
        flops=int(flops_per_row * n_pad),
        transcendentals=0,
        bytes_accessed=int(n_pad * dim_in * x_itemsize
                           + n_pad * dim_out * out_itemsize
                           + weight_bytes),
    )

    vmem_est = _vmem_estimate(tile_n)
    compiler_kwargs = dict(dimension_semantics=("parallel",))
    if vmem_est > (3 * (16 * 1024 * 1024)) // 4:   # near the v5e default scoped limit
        compiler_kwargs["vmem_limit_bytes"] = int(
            min(vmem_est + vmem_est // 2, vmem_cap))

    # ---- specs ------------------------------------------------------------------
    x_spec = pl.BlockSpec((tile_n, dim_in), lambda i: (i, 0))
    w_in_spec = pl.BlockSpec((dim_in, n_neurons), lambda i: (0, 0))
    w_out_spec = pl.BlockSpec((n_neurons, dim_out), lambda i: (0, 0))
    out_spec = pl.BlockSpec((tile_n, dim_out), lambda i: (i, 0))

    if n_hidden:
        in_specs = [x_spec, w_in_spec,
                    pl.BlockSpec((n_hidden, n_neurons, n_neurons),
                                 lambda i: (0, 0, 0)),
                    w_out_spec]
        operands = (x, w_in, w_hidden, w_out)
    else:
        in_specs = [x_spec, w_in_spec, w_out_spec]
        operands = (x, w_in, w_out)

    out = pl.pallas_call(
        _make_kernel(n_hidden, use_vpu_input),
        out_shape=jax.ShapeDtypeStruct((n_pad, dim_out), out_dtype),
        grid_spec=pltpu.PrefetchScalarGridSpec(
            num_scalar_prefetch=0,
            grid=(grid_len,),
            in_specs=in_specs,
            out_specs=out_spec,
        ),
        compiler_params=pltpu.CompilerParams(**compiler_kwargs),
        cost_estimate=cost,
    )(*operands)

    return out[:N] if n_pad != N else out


def _reference_forward(x, w_in, w_hidden, w_out):
    """Pure-JAX reference (same bf16/f32 mixed precision)."""
    h = jnp.maximum(
        jnp.dot(x.astype(jnp.bfloat16), w_in.astype(jnp.bfloat16),
                preferred_element_type=jnp.float32), 0.0).astype(jnp.bfloat16)
    n_hidden = 0 if (w_hidden is None or w_hidden.shape[0] == 0) else w_hidden.shape[0]
    for l in range(n_hidden):
        h = jnp.maximum(
            jnp.dot(h, w_hidden[l].astype(jnp.bfloat16),
                    preferred_element_type=jnp.float32), 0.0).astype(jnp.bfloat16)
    return jnp.dot(h, w_out.astype(jnp.bfloat16), preferred_element_type=jnp.float32)


if __name__ == "__main__":
    # Small shapes consistent with a typical threestudio tcnn config:
    #   dim_in=4, dim_out=3, n_neurons=64, n_hidden_layers=2
    N = 1024
    dim_in = 4
    dim_out = 3
    n_neurons = 64
    n_hidden_layers = 2

    key = jax.random.PRNGKey(0)
    k_x, k_win, k_whid, k_wout = jax.random.split(key, 4)

    x = jax.random.normal(k_x, (N, dim_in), dtype=jnp.float32)
    w_in = (jax.random.normal(k_win, (dim_in, n_neurons), dtype=jnp.float32)
            * (1.0 / jnp.sqrt(dim_in))).astype(jnp.bfloat16)
    w_hidden = (jax.random.normal(
        k_whid, (n_hidden_layers, n_neurons, n_neurons), dtype=jnp.float32)
        * (1.0 / jnp.sqrt(n_neurons))).astype(jnp.bfloat16)
    w_out = (jax.random.normal(k_wout, (n_neurons, dim_out), dtype=jnp.float32)
             * (1.0 / jnp.sqrt(n_neurons))).astype(jnp.bfloat16)

    ref = _reference_forward(x, w_in, w_hidden, w_out)

    # 1) Main path: 2 hidden layers; N=1024 splits into 2 tiles of 512 so the
    #    "parallel" batch axis covers both v7x TensorCores.
    out = jax.block_until_ready(tcnn_network_forward(x, w_in, w_hidden, w_out))
    assert out.shape == (N, dim_out)
    assert out.dtype == jnp.float32
    assert jnp.allclose(out, ref, atol=1e-2, rtol=1e-2), "mismatch vs reference"

    # 2) Zero-hidden-layer path (w_hidden operand dropped entirely).
    out0 = jax.block_until_ready(tcnn_network_forward(x, w_in, None, w_out))
    ref0 = _reference_forward(x, w_in, None, w_out)
    assert jnp.allclose(out0, ref0, atol=1e-2, rtol=1e-2), "mismatch (0 hidden layers)"

    # 3) Ragged batch: padded internally to the tile size and sliced back.
    xr = x[:1000]
    outr = jax.block_until_ready(tcnn_network_forward(xr, w_in, w_hidden, w_out))
    assert outr.shape == (1000, dim_out)
    assert jnp.allclose(outr, ref[:1000], atol=1e-2, rtol=1e-2), "mismatch (ragged N)"

    print("KERNEL_OK")
</pallas_src>

<mosaic_0001>
module attributes {stable_mosaic.version = 11 : i64} {
  func.func @kernel(%arg0: i32, %arg1: memref<512x4xf32, #tpu.memory_space<vmem>>, %arg2: memref<4x64xbf16, #tpu.memory_space<vmem>>, %arg3: memref<2x64x64xbf16, #tpu.memory_space<vmem>>, %arg4: memref<64x3xbf16, #tpu.memory_space<vmem>>, %arg5: memref<512x3xf32, #tpu.memory_space<vmem>>) attributes {dimension_semantics = [#tpu.dimension_semantics<parallel>], iteration_bounds = array<i64: 2>, scalar_prefetch = 0 : i64, scratch_operands = 0 : i64, tpu.core_type = #tpu.core_type<tc>, window_params = [{transform_indices = @transform_0, window_bounds = array<i64: 512, 4>}, {pipeline_mode = #tpu.pipeline_mode<synchronous>, transform_indices = @transform_1, window_bounds = array<i64: 4, 64>}, {pipeline_mode = #tpu.pipeline_mode<synchronous>, transform_indices = @transform_2, window_bounds = array<i64: 2, 64, 64>}, {pipeline_mode = #tpu.pipeline_mode<synchronous>, transform_indices = @transform_3, window_bounds = array<i64: 64, 3>}, {transform_indices = @transform_4, window_bounds = array<i64: 512, 3>}]} {
    %c0 = arith.constant 0 : index
    %c0_0 = arith.constant 0 : index
    %0 = vector.load %arg1[%c0, %c0_0] : memref<512x4xf32, #tpu.memory_space<vmem>>, vector<512x4xf32>
    %1 = arith.truncf %0 : vector<512x4xf32> to vector<512x4xbf16>
    %c0_1 = arith.constant 0 : index
    %c0_2 = arith.constant 0 : index
    %2 = vector.load %arg2[%c0_1, %c0_2] : memref<4x64xbf16, #tpu.memory_space<vmem>>, vector<4x64xbf16>
    %c0_3 = arith.constant 0 : index
    %c0_4 = arith.constant 0 : index
    %3 = vector.load %arg4[%c0_3, %c0_4] : memref<64x3xbf16, #tpu.memory_space<vmem>>, vector<64x3xbf16>
    %4 = arith.extf %1 : vector<512x4xbf16> to vector<512x4xf32>
    %5 = arith.extf %2 : vector<4x64xbf16> to vector<4x64xf32>
    %6 = vector.extract_strided_slice %4 {offsets = [0, 0], sizes = [512, 1], strides = [1, 1]} : vector<512x4xf32> to vector<512x1xf32>
    %7 = vector.extract_strided_slice %5 {offsets = [0, 0], sizes = [1, 64], strides = [1, 1]} : vector<4x64xf32> to vector<1x64xf32>
    %8 = vector.broadcast %6 : vector<512x1xf32> to vector<512x64xf32>
    %9 = vector.broadcast %7 : vector<1x64xf32> to vector<512x64xf32>
    %10 = arith.mulf %8, %9 : vector<512x64xf32>
    %11 = vector.extract_strided_slice %4 {offsets = [0, 1], sizes = [512, 1], strides = [1, 1]} : vector<512x4xf32> to vector<512x1xf32>
    %12 = vector.extract_strided_slice %5 {offsets = [1, 0], sizes = [1, 64], strides = [1, 1]} : vector<4x64xf32> to vector<1x64xf32>
    %13 = vector.broadcast %11 : vector<512x1xf32> to vector<512x64xf32>
    %14 = vector.broadcast %12 : vector<1x64xf32> to vector<512x64xf32>
    %15 = arith.mulf %13, %14 : vector<512x64xf32>
    %16 = arith.addf %10, %15 : vector<512x64xf32>
    %17 = vector.extract_strided_slice %4 {offsets = [0, 2], sizes = [512, 1], strides = [1, 1]} : vector<512x4xf32> to vector<512x1xf32>
    %18 = vector.extract_strided_slice %5 {offsets = [2, 0], sizes = [1, 64], strides = [1, 1]} : vector<4x64xf32> to vector<1x64xf32>
    %19 = vector.broadcast %17 : vector<512x1xf32> to vector<512x64xf32>
    %20 = vector.broadcast %18 : vector<1x64xf32> to vector<512x64xf32>
    %21 = arith.mulf %19, %20 : vector<512x64xf32>
    %22 = arith.addf %16, %21 : vector<512x64xf32>
    %23 = vector.extract_strided_slice %4 {offsets = [0, 3], sizes = [512, 1], strides = [1, 1]} : vector<512x4xf32> to vector<512x1xf32>
    %24 = vector.extract_strided_slice %5 {offsets = [3, 0], sizes = [1, 64], strides = [1, 1]} : vector<4x64xf32> to vector<1x64xf32>
    %25 = vector.broadcast %23 : vector<512x1xf32> to vector<512x64xf32>
    %26 = vector.broadcast %24 : vector<1x64xf32> to vector<512x64xf32>
    %27 = arith.mulf %25, %26 : vector<512x64xf32>
    %28 = arith.addf %22, %27 : vector<512x64xf32>
    %cst = arith.constant 0.000000e+00 : f32
    %29 = vector.broadcast %cst : f32 to vector<512x64xf32>
    %30 = arith.maximumf %28, %29 : vector<512x64xf32>
    %31 = arith.truncf %30 : vector<512x64xf32> to vector<512x64xbf16>
    %c0_5 = arith.constant 0 : index
    %c0_6 = arith.constant 0 : index
    %c0_7 = arith.constant 0 : index
    %32 = vector.load %arg3[%c0_5, %c0_6, %c0_7] : memref<2x64x64xbf16, #tpu.memory_space<vmem>>, vector<1x64x64xbf16>
    %33 = vector.shape_cast %32 : vector<1x64x64xbf16> to vector<64x64xbf16>
    %cst_8 = arith.constant dense<0.000000e+00> : vector<512x64xf32>
    %34 = tpu.matmul %31, %33, %cst_8 {dimension_numbers = #tpu.dot_dimension_numbers<[1], [0], [0], [1], [0, 0, 1, 1], [], []>} : vector<512x64xbf16>, vector<64x64xbf16>, vector<512x64xf32> -> vector<512x64xf32>
    %cst_9 = arith.constant 0.000000e+00 : f32
    %35 = vector.broadcast %cst_9 : f32 to vector<512x64xf32>
    %36 = arith.maximumf %34, %35 : vector<512x64xf32>
    %37 = arith.truncf %36 : vector<512x64xf32> to vector<512x64xbf16>
    %c1 = arith.constant 1 : index
    %c0_10 = arith.constant 0 : index
    %c0_11 = arith.constant 0 : index
    %38 = vector.load %arg3[%c1, %c0_10, %c0_11] : memref<2x64x64xbf16, #tpu.memory_space<vmem>>, vector<1x64x64xbf16>
    %39 = vector.shape_cast %38 : vector<1x64x64xbf16> to vector<64x64xbf16>
    %cst_12 = arith.constant dense<0.000000e+00> : vector<512x64xf32>
    %40 = tpu.matmul %37, %39, %cst_12 {dimension_numbers = #tpu.dot_dimension_numbers<[1], [0], [0], [1], [0, 0, 1, 1], [], []>} : vector<512x64xbf16>, vector<64x64xbf16>, vector<512x64xf32> -> vector<512x64xf32>
    %cst_13 = arith.constant 0.000000e+00 : f32
    %41 = vector.broadcast %cst_13 : f32 to vector<512x64xf32>
    %42 = arith.maximumf %40, %41 : vector<512x64xf32>
    %43 = arith.truncf %42 : vector<512x64xf32> to vector<512x64xbf16>
    %cst_14 = arith.constant dense<0.000000e+00> : vector<512x3xf32>
    %44 = tpu.matmul %43, %3, %cst_14 {dimension_numbers = #tpu.dot_dimension_numbers<[1], [0], [0], [1], [0, 0, 1, 1], [], []>} : vector<512x64xbf16>, vector<64x3xbf16>, vector<512x3xf32> -> vector<512x3xf32>
    %c0_15 = arith.constant 0 : index
    %c0_16 = arith.constant 0 : index
    %45 = vector.load %arg5[%c0_15, %c0_16] : memref<512x3xf32, #tpu.memory_space<vmem>>, vector<512x3xf32>
    tpu.vector_store %arg5[%c0_15, %c0_16], %44 {strides = array<i32>} : memref<512x3xf32, #tpu.memory_space<vmem>>, vector<512x3xf32>,
    return
  }
  func.func @transform_0(%arg0: i32) -> (i32, i32) {
    %c0_i32 = arith.constant 0 : i32
    %c0_i32_0 = arith.constant 0 : i32
    return %arg0, %c0_i32 : i32, i32
  }
  func.func @transform_1(%arg0: i32) -> (i32, i32) {
    %c0_i32 = arith.constant 0 : i32
    %c0_i32_0 = arith.constant 0 : i32
    %c0_i32_1 = arith.constant 0 : i32
    return %c0_i32, %c0_i32_0 : i32, i32
  }
  func.func @transform_2(%arg0: i32) -> (i32, i32, i32) {
    %c0_i32 = arith.constant 0 : i32
    %c0_i32_0 = arith.constant 0 : i32
    %c0_i32_1 = arith.constant 0 : i32
    %c0_i32_2 = arith.constant 0 : i32
    return %c0_i32, %c0_i32_0, %c0_i32_1 : i32, i32, i32
  }
  func.func @transform_3(%arg0: i32) -> (i32, i32) {
    %c0_i32 = arith.constant 0 : i32
    %c0_i32_0 = arith.constant 0 : i32
    %c0_i32_1 = arith.constant 0 : i32
    return %c0_i32, %c0_i32_0 : i32, i32
  }
  func.func @transform_4(%arg0: i32) -> (i32, i32) {
    %c0_i32 = arith.constant 0 : i32
    %c0_i32_0 = arith.constant 0 : i32
    return %arg0, %c0_i32 : i32, i32
  }
}

</mosaic_0001>

<bundles_post_ra>
// kernel: tpu_custom_call.1
= control target key start
LH: loop header
LB: loop body
LE: loop exit
PB: predicated region body
PF: predicated region fallthrough
CT: control target
= control target key end

     0   :  { %s4797_s15 = smov 0   ;;  %s5918_s0 = inlined_call_operand.vmem [shape: f32[1024,4], index: 0, kind: input, shape index: {}]   ;;  %s5919_s1 = inlined_call_operand.vmem [shape: bf16[4,64], index: 1, kind: input, shape index: {}]   ;;  %s5920_s2 = inlined_call_operand.vmem [shape: bf16[2,64,64], index: 2, kind: input, shape index: {}]   ;;  %s5921_s3 = inlined_call_operand.vmem [shape: bf16[64,3], index: 3, kind: input, shape index: {}]   ;;  %s5922_s4 = inlined_call_operand.vmem [shape: f32[1024,3], index: 4, kind: output, shape index: {}]  }
   0x1 LB: > { %s3578_s16 = sadd.s32 4294967295, %s4766_s15   ;;  %p3582_p0 = scmp.ge.s32.totalorder %s4766_s15, 1  ;;  %s4766_s15 = sphi %s4797_s15, %s14_s15  }
   0x2   : > { %p163_p1 = scmp.lt.s32.totalorder %s4766_s15, 3 }
   0x4   : > { %p164_p2 = pnand %p3582_p0, %p163_p1 }
   0x6   : > { %167 = sbr.rel (%p164_p2) target bundleno = 1129 (0x469), region = 36 }
   0xb   : > { %s3583_s17 = sshll.u32 %s3578_s16, 6  ;;  %v5923_v0 = vmov 0   ;;  %v5927_v59 = vmov 1   ;;  %vm2052_vm0 = vcmask 523264   ;;  %vm3457_vm1 = vcmask 23552  }
   0xc   : > { %4060 = vset.pattern.permute.xlu1 %v5923_v0  ;;  %4049 = vset.pattern.permute.xlu0 %v5923_v0  ;;  %p190_p3 = scmp.lt.s32.totalorder %s3583_s17, 127 }
   0xe   : > { %s5998_s17 = smov (!%p190_p3, %s3583_s17), 127 }
   0xf   : > { %s3584_s18 = sshll.u32 %s5998_s17, 3 }
  0x10   : > { %s4815_s21 = scalar_lea.vmem %s5918_s0, %s3584_s18  ;;  %s5783_s27 = scalar_lea.vmem %s5922_s4, %s3584_s18 }
  0x11   : > { %v206_v1 = vld [vmem:[%s4815_s21 + $0x20] sm:$0xff]  ;;  %v207_v2 = vld [vmem:[%s4815_s21 + $0x28] sm:$0xff]  ;;  %v208_v5 = vld [vmem:[%s4815_s21 + $0x30] sm:$0xff] }
  0x12   : > { %v202_v3 = vld [vmem:[%s4815_s21] sm:$0xff]  ;;  %v203_v4 = vld [vmem:[%s4815_s21 + $0x8] sm:$0xff]  ;;  %v209_v6 = vld [vmem:[%s4815_s21 + $0x38] sm:$0xff]  ;;  %v4831_v15 = vpack.i.bf16 %v207_v2, %v206_v1 }
  0x13   : > { %v204_v7 = vld [vmem:[%s4815_s21 + $0x10] sm:$0xff]  ;;  %v205_v8 = vld [vmem:[%s4815_s21 + $0x18] sm:$0xff]  ;;  %v210_v11 = vld [vmem:[%s4815_s21 + $0x40] sm:$0xff]  ;;  %v4835_v18 = vpack.i.bf16 %v203_v4, %v202_v3  ;;  %v4838_v19 = vpack.i.bf16 %v209_v6, %v208_v5 }
  0x14   : > { %v212_v9 = vld [vmem:[%s4815_s21 + $0x50] sm:$0xff]  ;;  %v213_v10 = vld [vmem:[%s4815_s21 + $0x58] sm:$0xff]  ;;  %v211_v12 = vld [vmem:[%s4815_s21 + $0x48] sm:$0xff]  ;;  %4062 = vperm.xlu1 %4060, %v4831_v15   ;;  %v4841_v20 = vpack.i.bf16 %v205_v8, %v204_v7 }
  0x15   : > { %v216_v13 = vld [vmem:[%s4815_s21 + $0x70] sm:$0xff]  ;;  %v217_v14 = vld [vmem:[%s4815_s21 + $0x78] sm:$0xff]  ;;  %v214_v16 = vld [vmem:[%s4815_s21 + $0x60] sm:$0xff]  ;;  %4051 = vperm.xlu0 %4049, %v4835_v18   ;;  %v4848_v25 = vpack.i.bf16 %v213_v10, %v212_v9  ;;  %v4851_v26 = vpack.i.bf16 %v211_v12, %v210_v11  ;;  %v5925_v11 = vmov 2  }
  0x16   : > { %v215_v17 = vld [vmem:[%s4815_s21 + $0x68] sm:$0xff]  ;;  %v220_v21 = vld [vmem:[%s4815_s21 + $0x90] sm:$0xff]  ;;  %v221_v22 = vld [vmem:[%s4815_s21 + $0x98] sm:$0xff]  ;;  %v4858_v31 = vpack.i.bf16 %v217_v14, %v216_v13 }
  0x17   : > { %v218_v23 = vld [vmem:[%s4815_s21 + $0x80] sm:$0xff]  ;;  %v219_v24 = vld [vmem:[%s4815_s21 + $0x88] sm:$0xff]  ;;  %v224_v27 = vld [vmem:[%s4815_s21 + $0xb0] sm:$0xff]  ;;  %v4861_v32 = vpack.i.bf16 %v215_v17, %v214_v16  ;;  %v4872_v41 = vpack.i.bf16 %v221_v22, %v220_v21  ;;  %v5930_v16 = vmov 3  }
  0x18   : > { %4067 = vperm.xlu1 %4060, %v4838_v19   ;;  %v225_v28 = vld [vmem:[%s4815_s21 + $0xb8] sm:$0xff]  ;;  %v222_v29 = vld [vmem:[%s4815_s21 + $0xa0] sm:$0xff]  ;;  %v223_v30 = vld [vmem:[%s4815_s21 + $0xa8] sm:$0xff]  ;;  %v4875_v42 = vpack.i.bf16 %v219_v24, %v218_v23 }
  0x19   : > { %4056 = vperm.xlu0 %4049, %v4841_v20   ;;  %v228_v33 = vld [vmem:[%s4815_s21 + $0xd0] sm:$0xff]  ;;  %v229_v34 = vld [vmem:[%s4815_s21 + $0xd8] sm:$0xff]  ;;  %v226_v35 = vld [vmem:[%s4815_s21 + $0xc0] sm:$0xff]  ;;  %v4878_v43 = vpack.i.bf16 %v225_v28, %v224_v27  ;;  %v4883_v46 = vpack.i.bf16 %v223_v30, %v222_v29 }
  0x1a   : > { %v227_v36 = vld [vmem:[%s4815_s21 + $0xc8] sm:$0xff]  ;;  %v232_v37 = vld [vmem:[%s4815_s21 + $0xf0] sm:$0xff]  ;;  %v233_v38 = vld [vmem:[%s4815_s21 + $0xf8] sm:$0xff]  ;;  %v4888_v49 = vpack.i.bf16 %v229_v34, %v228_v33 }
  0x1b   : > { %v230_v39 = vld [vmem:[%s4815_s21 + $0xe0] sm:$0xff]  ;;  %v231_v40 = vld [vmem:[%s4815_s21 + $0xe8] sm:$0xff]  ;;  %v236_v44 = vld [vmem:[%s4815_s21 + $0x110] sm:$0xff]  ;;  %v4891_v50 = vpack.i.bf16 %v227_v36, %v226_v35  ;;  %v4894_v51 = vpack.i.bf16 %v233_v38, %v232_v37 }
  0x1c   : > { %4077 = vperm.xlu1 %4060, %v4848_v25   ;;  %v237_v45 = vld [vmem:[%s4815_s21 + $0x118] sm:$0xff]  ;;  %v240_v47 = vld [vmem:[%s4815_s21 + $0x130] sm:$0xff]  ;;  %v4899_v54 = vpack.i.bf16 %v231_v40, %v230_v39  ;;  %v234_v5 = vld [vmem:[%s4815_s21 + $0x100] sm:$0xff] }
  0x1d   : > { %4072 = vperm.xlu0 %4049, %v4851_v26   ;;  %v241_v48 = vld [vmem:[%s4815_s21 + $0x138] sm:$0xff]  ;;  %v244_v52 = vld [vmem:[%s4815_s21 + $0x150] sm:$0xff]  ;;  %v4901_v55 = vpack.i.bf16 %v237_v45, %v236_v44  ;;  %v235_v6 = vld [vmem:[%s4815_s21 + $0x108] sm:$0xff]  ;;  %v692_v45 = vlaneseq }
  0x1e   : > { %v245_v53 = vld [vmem:[%s4815_s21 + $0x158] sm:$0xff]  ;;  %v248_v56 = vld [vmem:[%s4815_s21 + $0x170] sm:$0xff]  ;;  %v4907_v58 = vpack.i.bf16 %v241_v48, %v240_v47  ;;  %v238_v7 = vld [vmem:[%s4815_s21 + $0x120] sm:$0xff]  ;;  %v4946_v12 = vpack.i.bf16 %v235_v6, %v234_v5 }
  0x1f   : > { %v249_v57 = vld [vmem:[%s4815_s21 + $0x178] sm:$0xff]  ;;  %v252_v60 = vld [vmem:[%s4815_s21 + $0x190] sm:$0xff]  ;;  %v4915_v62 = vpack.i.bf16 %v245_v53, %v244_v52  ;;  %v239_v8 = vld [vmem:[%s4815_s21 + $0x128] sm:$0xff]  ;;  %v5068_v53 = vshrl.u32 %v692_v45, 7 }
  0x20   : > { %4087 = vperm.xlu1 %4060, %v4858_v31   ;;  %v253_v61 = vld [vmem:[%s4815_s21 + $0x198] sm:$0xff]  ;;  %v256_v63 = vld [vmem:[%s4815_s21 + $0x1b0] sm:$0xff]  ;;  %v4921_v2 = vpack.i.bf16 %v249_v57, %v248_v56  ;;  %v242_v9 = vld [vmem:[%s4815_s21 + $0x140] sm:$0xff]  ;;  %v4952_v17 = vpack.i.bf16 %v239_v8, %v238_v7 }
  0x21   : > { %4082 = vperm.xlu0 %4049, %v4861_v32   ;;  %v257_v1 = vld [vmem:[%s4815_s21 + $0x1b8] sm:$0xff]  ;;  %v4925_v3 = vpack.i.bf16 %v253_v61, %v252_v60  ;;  %v243_v10 = vld [vmem:[%s4815_s21 + $0x148] sm:$0xff]  ;;  %v246_v13 = vld [vmem:[%s4815_s21 + $0x160] sm:$0xff]  ;;  %v694_v5 = vsub.s32 0, %v5068_v53  ;;  %v1018_v8 = vsub.s32 1, %v5068_v53 }
  0x22   : > { %v4929_v4 = vpack.i.bf16 %v257_v1, %v256_v63  ;;  %v247_v14 = vld [vmem:[%s4815_s21 + $0x168] sm:$0xff]  ;;  %v250_v21 = vld [vmem:[%s4815_s21 + $0x180] sm:$0xff]  ;;  %v4958_v23 = vpack.i.bf16 %v243_v10, %v242_v9  ;;  %v4749_v28 = vld [vmem:[%s5920_s2 + $0x10] sm:$0xff]  }
  0x23   : > { %v251_v22 = vld [vmem:[%s4815_s21 + $0x188] sm:$0xff]  ;;  %v4962_v24 = vpack.i.bf16 %v247_v14, %v246_v13  ;;  %v4751_v30 = vld [vmem:[%s5920_s2] sm:$0xff]  }
  0x24   : > { %4097 = vperm.xlu1 %4060, %v4872_v41   ;;  %5951 = vst [vmem:[#allocation2_spill] sm:$0xff] %v4929_v4  ;;  %v4967_v27 = vpack.i.bf16 %v251_v22, %v250_v21  ;;  %v4750_v29 = vld [vmem:[%s5920_s2 + $0x8] sm:$0xff]   ;;  %v254_v48 = vld [vmem:[%s4815_s21 + $0x1a0] sm:$0xff] }
  0x25   : > { %4092 = vperm.xlu0 %4049, %v4875_v42   ;;  %v255_v52 = vld [vmem:[%s4815_s21 + $0x1a8] sm:$0xff]  ;;  %v298_v56 = vld [vmem:[%s5919_s1] sm:$0x3] }
  0x26   : > { %v258_v61 = vld [vmem:[%s4815_s21 + $0x1c0] sm:$0xff]  ;;  %v259_v63 = vld [vmem:[%s4815_s21 + $0x1c8] sm:$0xff]  ;;  %v5082_v1 = vunpack.c.l.bf16 %v298_v56  ;;  %v5091_v13 = vpack.i.bf16 %v255_v52, %v254_v48 }
  0x27   : > { %v5106_v45 = vpack.i.bf16 %v259_v63, %v258_v61 }
  0x28   : > { %4107 = vperm.xlu1 %4060, %v4878_v43   ;;  %5957 = vst [vmem:[#allocation8_spill] sm:$0xff] %v5091_v13 }
  0x29   : > { %4102 = vperm.xlu0 %4049, %v4883_v46   ;;  %5959 = vst [vmem:[#allocation10_spill] sm:$0xff] %v5106_v45 }
  0x2c   : > { %4117 = vperm.xlu1 %4060, %v4888_v49  }
  0x2d   : > { %4112 = vperm.xlu0 %4049, %v4891_v50  }
  0x30   : > { %4127 = vperm.xlu1 %4060, %v4894_v51  }
  0x31   : > { %4122 = vperm.xlu0 %4049, %v4899_v54  }
  0x34   : > { %4132 = vperm.xlu1 %4060, %v4901_v55  }
  0x35   : > { %4161 = vset.pattern.permute.xlu0 %v5927_v59 }
  0x36   : > { %4163 = vperm.xlu0 %4161, %v4835_v18  }
  0x38   : > { %4137 = vperm.xlu1 %4060, %v4907_v58  }
  0x3a   : > { %4191 = vperm.xlu0 %4161, %v4831_v15  }
  0x3c   : > { %4142 = vperm.xlu1 %4060, %v4915_v62  }
  0x3e   : > { %4219 = vperm.xlu0 %4161, %v4851_v26  }
  0x40   : > { %4147 = vperm.xlu1 %4060, %v4921_v2  }
  0x42   : > { %4247 = vperm.xlu0 %4161, %v4861_v32  }
  0x44   : > { %4152 = vperm.xlu1 %4060, %v4925_v3  }
  0x46   : > { %4275 = vperm.xlu0 %4161, %v4875_v42  }
  0x48   : > { %4157 = vperm.xlu1 %4060, %v4929_v4  }
  0x4a   : > { %4303 = vperm.xlu0 %4161, %v4883_v46  }
  0x4c   : > { %4167 = vset.pattern.permute.xlu1 %v5927_v59 }
  0x4d   : > { %4169 = vperm.xlu1 %4167, %v4841_v20  }
  0x4e   : > { %4331 = vperm.xlu0 %4161, %v4891_v50  }
  0x51   : > { %4173 = vset.pattern.permute.xlu1 %v5925_v11 }
  0x52   : > { %4359 = vperm.xlu0 %4161, %v4899_v54   ;;  %4175 = vperm.xlu1 %4173, %v4835_v18  }
  0x56   : > { %4387 = vperm.xlu0 %4161, %v4946_v12   ;;  %4179 = vset.pattern.permute.xlu1 %v5930_v16 }
  0x57   : > { %4181 = vperm.xlu1 %4179, %v4835_v18   ;;  %v4748_v18 = vld [vmem:[%s5920_s2 + $0x18] sm:$0xff]  }
  0x58   : > { %3813 = vmatprep.subr.bf16.mxu0 %v4748_v18  ;;  %4029 = vmatprep.subr.bf16.mxu1 %v4748_v18 }
  0x59   : > { %3814 = vmatpush3.bf16.msra.mxu0 %v4748_v18  ;;  %4033 = vmatpush3.bf16.msra.mxu1 %v4748_v18 }
  0x5a   : > { %4415 = vperm.xlu0 %4161, %v4952_v17   ;;  %3815 = vmatprep.subr.bf16.mxu0 %v4749_v28 }
  0x5b   : > { %4186 = vperm.xlu1 %4179, %v4841_v20   ;;  %4030 = vmatprep.subr.bf16.mxu1 %v4749_v28 }
  0x5d   : > { %3816 = vmatpush3.bf16.msra.mxu0 %v4749_v28  ;;  %4034 = vmatpush3.bf16.msra.mxu1 %v4749_v28  ;;  %v5099_v28 = vrot.slane %v5082_v1, %v1018_v8 }
  0x5e   : > { %4443 = vperm.xlu0 %4161, %v4958_v23   ;;  %3817 = vmatprep.subr.bf16.mxu0 %v4750_v29 }
  0x5f   : > { %4195 = vset.pattern.permute.xlu1 %v5927_v59  ;;  %4031 = vmatprep.subr.bf16.mxu1 %v4750_v29 }
  0x60   : > { %4197 = vperm.xlu1 %4195, %v4838_v19  }
  0x61   : > { %3818 = vmatpush3.bf16.msra.mxu0 %v4750_v29  ;;  %4035 = vmatpush3.bf16.msra.mxu1 %v4750_v29 }
  0x62   : > { %4471 = vperm.xlu0 %4161, %v4962_v24   ;;  %3819 = vmatprep.subr.bf16.mxu0 %v4751_v30 }
  0x63   : > { %4032 = vmatprep.subr.bf16.mxu1 %v4751_v30 }
  0x64   : > { %4201 = vset.pattern.permute.xlu1 %v5925_v11 }
  0x65   : > { %4203 = vperm.xlu1 %4201, %v4831_v15   ;;  %3820 = vmatpush3.bf16.msra.mxu0 %v4751_v30 }
  0x66   : > { %4499 = vperm.xlu0 %4161, %v4967_v27   ;;  %4036 = vmatpush3.bf16.msra.mxu1 %v4751_v30 }
  0x69   : > { %4207 = vset.pattern.permute.xlu1 %v5930_v16 }
  0x6a   : > { %4503 = vset.pattern.permute.xlu0 %v5925_v11  ;;  %4209 = vperm.xlu1 %4207, %v4831_v15  }
  0x6b   : > { %4505 = vperm.xlu0 %4503, %v4841_v20  }
  0x6e   : > { %4214 = vperm.xlu1 %4207, %v4838_v19  }
  0x6f   : > { %4510 = vperm.xlu0 %4503, %v4838_v19  }
  0x72   : > { %4223 = vset.pattern.permute.xlu1 %v5927_v59 }
  0x73   : > { %4225 = vperm.xlu1 %4223, %v4848_v25   ;;  %4515 = vperm.xlu0 %4503, %v4848_v25  }
  0x77   : > { %4229 = vset.pattern.permute.xlu1 %v5925_v11  ;;  %4520 = vperm.xlu0 %4503, %v4858_v31  }
  0x78   : > { %4231 = vperm.xlu1 %4229, %v4851_v26  }
  0x7b   : > { %4525 = vperm.xlu0 %4503, %v4872_v41  }
  0x7c   : > { %4235 = vset.pattern.permute.xlu1 %v5930_v16 }
  0x7d   : > { %4237 = vperm.xlu1 %4235, %v4851_v26  }
  0x7f   : > { %4530 = vperm.xlu0 %4503, %v4878_v43  }
  0x81   : > { %4242 = vperm.xlu1 %4235, %v4848_v25  }
  0x83   : > { %4535 = vperm.xlu0 %4503, %v4888_v49  }
  0x85   : > { %4251 = vset.pattern.permute.xlu1 %v5927_v59 }
  0x86   : > { %4253 = vperm.xlu1 %4251, %v4858_v31  }
  0x87   : > { %4540 = vperm.xlu0 %4503, %v4894_v51  }
  0x8a   : > { %4257 = vset.pattern.permute.xlu1 %v5925_v11 }
  0x8b   : > { %4259 = vperm.xlu1 %4257, %v4861_v32   ;;  %4545 = vperm.xlu0 %4503, %v4901_v55  }
  0x8f   : > { %v5008_v15 = vpop.permute.xlu1 %4062  ;;  %4263 = vset.pattern.permute.xlu1 %v5930_v16  ;;  %4550 = vperm.xlu0 %4503, %v4907_v58  }
  0x90   : > { %4265 = vperm.xlu1 %4263, %v4861_v32   ;;  %v5013_v19 = vpop.permute.xlu0 %4051 }
  0x93   : > { %v5015_v20 = vpop.permute.xlu1 %4067  ;;  %4555 = vperm.xlu0 %4503, %v4915_v62  }
  0x94   : > { %4270 = vperm.xlu1 %4263, %v4858_v31   ;;  %v5019_v25 = vpop.permute.xlu0 %4056 }
  0x97   : > { %v5021_v26 = vpop.permute.xlu1 %4077  ;;  %4560 = vperm.xlu0 %4503, %v4921_v2  }
  0x98   : > { %4279 = vset.pattern.permute.xlu1 %v5927_v59  ;;  %v5025_v33 = vpop.permute.xlu0 %4072 }
  0x99   : > { %4281 = vperm.xlu1 %4279, %v4872_v41  }
  0x9b   : > { %v5028_v32 = vpop.permute.xlu1 %4087  ;;  %4577 = vperm.xlu0 %4503, %v4925_v3  }
  0x9c   : > { %v4083_v34 = vpop.permute.xlu0 %4082 }
  0x9d   : > { %4285 = vset.pattern.permute.xlu1 %v5925_v11  ;;  %v4085_v7 = vunpack.i.h.bf16 %v4083_v34  ;;  %v4084_v9 = vunpack.i.l.bf16 %v4083_v34 }
  0x9e   : > { %4287 = vperm.xlu1 %4285, %v4875_v42  }
  0x9f   : > { %v5033_v31 = vpop.permute.xlu1 %4097  ;;  %4605 = vperm.xlu0 %4503, %v4929_v4  }
  0xa0   : > { %v4093_v35 = vpop.permute.xlu0 %4092 }
  0xa1   : > { %v4095_v14 = vunpack.i.h.bf16 %v4093_v35  ;;  %v4094_v21 = vunpack.i.l.bf16 %v4093_v35 }
  0xa2   : > { %4291 = vset.pattern.permute.xlu1 %v5930_v16 }
  0xa3   : > { %v5037_v36 = vpop.permute.xlu1 %4107  ;;  %4293 = vperm.xlu1 %4291, %v4875_v42   ;;  %4609 = vset.pattern.permute.xlu0 %v5923_v0 }
  0xa4   : > { %v5041_v37 = vpop.permute.xlu0 %4102  ;;  %4611 = vperm.xlu0 %4609, %v4946_v12  }
  0xa7   : > { %v5044_v38 = vpop.permute.xlu1 %4117  ;;  %4298 = vperm.xlu1 %4291, %v4872_v41  }
  0xa8   : > { %v5047_v39 = vpop.permute.xlu0 %4112  ;;  %4616 = vperm.xlu0 %4609, %v4952_v17  }
  0xab   : > { %v5050_v40 = vpop.permute.xlu1 %4127  ;;  %4307 = vset.pattern.permute.xlu1 %v5927_v59 }
  0xac   : > { %5952 = vst [vmem:[#allocation3_spill] sm:$0xff] %v5050_v40  ;;  %4309 = vperm.xlu1 %4307, %v4878_v43   ;;  %v5054_v42 = vpop.permute.xlu0 %4122  ;;  %4621 = vperm.xlu0 %4609, %v4958_v23  }
  0xaf   : > { %v5057_v44 = vpop.permute.xlu1 %4132 }
  0xb0   : > { %5953 = vst [vmem:[#allocation4_spill] sm:$0xff] %v5057_v44  ;;  %4313 = vset.pattern.permute.xlu1 %v5925_v11  ;;  %4626 = vperm.xlu0 %4609, %v4962_v24  }
  0xb1   : > { %v5061_v41 = vpop.permute.xlu0 %4163  ;;  %4315 = vperm.xlu1 %4313, %v4883_v46  }
  0xb3   : > { %v5064_v47 = vpop.permute.xlu1 %4137 }
  0xb4   : > { %5954 = vst [vmem:[#allocation5_spill] sm:$0xff] %v5064_v47  ;;  %4631 = vperm.xlu0 %4609, %v4967_v27  }
  0xb5   : > { %v5074_v57 = vpop.permute.xlu0 %4191  ;;  %4319 = vset.pattern.permute.xlu1 %v5930_v16 }
  0xb6   : > { %4321 = vperm.xlu1 %4319, %v4883_v46   ;;  %v5094_v46 = vrot.slane %v5082_v1, %v694_v5 }
  0xb7   : > { %v5078_v60 = vpop.permute.xlu1 %4142 }
  0xb8   : > { %5955 = vst [vmem:[#allocation6_spill] sm:$0xff] %v5078_v60  ;;  %4636 = vperm.xlu0 %4609, %v5091_v13   ;;  %v709_v18 = vmul.f32 %v4085_v7, %v5094_v46  ;;  %v713_v35 = vmul.f32 %v4095_v14, %v5094_v46  ;;  %v712_v48 = vmul.f32 %v4094_v21, %v5094_v46  ;;  %v4105_v7 = vunpack.i.h.bf16 %v5041_v37 }
  0xb9   : > { %v5085_v6 = vpop.permute.xlu0 %4219  ;;  %v4054_v14 = vunpack.i.h.bf16 %v5013_v19 }
  0xba   : > { %4326 = vperm.xlu1 %4319, %v4878_v43   ;;  %v708_v43 = vmul.f32 %v4084_v9, %v5094_v46 }
  0xbb   : > { %v5089_v10 = vpop.permute.xlu1 %4147 }
  0xbc   : > { %5956 = vst [vmem:[#allocation7_spill] sm:$0xff] %v5089_v10  ;;  %4652 = vperm.xlu0 %4609, %v5106_v45   ;;  %v5962_v10 = vmov 1  }
  0xbd   : > { %v4248_v22 = vpop.permute.xlu0 %4247 }
  0xbe   : > { %4335 = vset.pattern.permute.xlu1 %v5927_v59  ;;  %v4250_v29 = vunpack.i.h.bf16 %v4248_v22  ;;  %v4249_v30 = vunpack.i.l.bf16 %v4248_v22  ;;  %v4104_v22 = vunpack.i.l.bf16 %v5041_v37  ;;  %v4115_v37 = vunpack.i.h.bf16 %v5047_v39 }
  0xbf   : > { %v5103_v34 = vpop.permute.xlu1 %4152  ;;  %4337 = vperm.xlu1 %4335, %v4888_v49   ;;  %v697_v59 = vmul.f32 %v4054_v14, %v5094_v46 }
  0xc0   : > { %5958 = vst [vmem:[#allocation9_spill] sm:$0xff] %v5103_v34  ;;  %v1033_v52 = vmul.f32 %v4250_v29, %v5099_v28  ;;  %v1032_v56 = vmul.f32 %v4249_v30, %v5099_v28  ;;  %v4053_v30 = vunpack.i.l.bf16 %v5013_v19  ;;  %4679 = vset.pattern.permute.xlu0 %v5930_v16  ;;  %v4165_v16 = vunpack.i.l.bf16 %v5061_v41 }
  0xc1   : > { %v4276_v5 = vpop.permute.xlu0 %4275  ;;  %4681 = vperm.xlu0 %4679, %v5106_v45  }
  0xc2   : > { %v4278_v8 = vunpack.i.h.bf16 %v4276_v5  ;;  %v4277_v9 = vunpack.i.l.bf16 %v4276_v5  ;;  %v5115_v0 = vadd.f32 %v1032_v56, %v708_v43  ;;  %v5117_v61 = vadd.f32 %v1033_v52, %v709_v18 }
  0xc3   : > { %v5119_v63 = vpop.permute.xlu1 %4157  ;;  %4341 = vset.pattern.permute.xlu1 %v5925_v11  ;;  %v1406_v18 = vsub.s32 2, %v5068_v53  ;;  %v717_v52 = vmul.f32 %v4105_v7, %v5094_v46  ;;  %v4114_v56 = vunpack.i.l.bf16 %v5047_v39  ;;  %v5961_v7 = vmov 3  }
  0xc4   : > { %5960 = vst [vmem:[#allocation11_spill] sm:$0xff] %v5119_v63  ;;  %v1037_v21 = vmul.f32 %v4278_v8, %v5099_v28  ;;  %v1036_v29 = vmul.f32 %v4277_v9, %v5099_v28  ;;  %4343 = vperm.xlu1 %4341, %v4891_v50   ;;  %v716_v9 = vmul.f32 %v4104_v22, %v5094_v46  ;;  %v4166_v63 = vunpack.i.h.bf16 %v5061_v41 }
  0xc5   : > { %v4304_v43 = vpop.permute.xlu0 %4303  ;;  %v1794_v39 = vsub.s32 3, %v5068_v53  ;;  %4685 = vset.pattern.permute.xlu0 %v5962_v10  ;;  %v696_v60 = vmul.f32 %v4053_v30, %v5094_v46  ;;  %v4124_v53 = vunpack.i.l.bf16 %v5054_v42 }
  0xc6   : > { %v5132_v5 = vadd.f32 %v1036_v29, %v712_v48  ;;  %v5134_v8 = vadd.f32 %v1037_v21, %v713_v35  ;;  %v4306_v19 = vunpack.i.h.bf16 %v4304_v43  ;;  %v4305_v11 = vunpack.i.l.bf16 %v4304_v43  ;;  %4687 = vperm.xlu0 %4685, %v5091_v13   ;;  %v262_v13 = vld [vmem:[%s4815_s21 + $0x1e0] sm:$0xff] }
  0xc7   : > { %v721_v35 = vmul.f32 %v4115_v37, %v5094_v46  ;;  %v4125_v48 = vunpack.i.h.bf16 %v5054_v42  ;;  %v720_v29 = vmul.f32 %v4114_v56, %v5094_v46  ;;  %v5166_v42 = vrot.slane %v5082_v1, %v1406_v18 }
  0xc8   : > { %v5141_v34 = vpop.permute.xlu1 %4169  ;;  %4347 = vset.pattern.permute.xlu1 %v5961_v7  ;;  %v1041_v22 = vmul.f32 %v4306_v19, %v5099_v28  ;;  %v1040_v21 = vmul.f32 %v4305_v11, %v5099_v28  ;;  %v1021_v11 = vmul.f32 %v4166_v63, %v5099_v28 }
  0xc9   : > { %4349 = vperm.xlu1 %4347, %v4891_v50   ;;  %v4332_v14 = vpop.permute.xlu0 %4331  ;;  %v1020_v50 = vmul.f32 %v4165_v16, %v5099_v28  ;;  %v724_v16 = vmul.f32 %v4124_v53, %v5094_v46 }
  0xca   : > { %v4334_v41 = vunpack.i.h.bf16 %v4332_v14  ;;  %v4333_v43 = vunpack.i.l.bf16 %v4332_v14  ;;  %v5154_v37 = vadd.f32 %v1040_v21, %v716_v9  ;;  %v5156_v47 = vadd.f32 %v1041_v22, %v717_v52 }
  0xcb   : > { %v725_v14 = vmul.f32 %v4125_v48, %v5094_v46  ;;  %v1085_v45 = vadd.f32 %v1021_v11, %v697_v59  ;;  %v5174_v48 = vrot.slane %v5082_v1, %v1794_v39 }
  0xcc   : > { %v1045_v56 = vmul.f32 %v4334_v41, %v5099_v28  ;;  %v1044_v19 = vmul.f32 %v4333_v43, %v5099_v28  ;;  %v1084_v43 = vadd.f32 %v1020_v50, %v696_v60 }
  0xcd   : > { %4354 = vperm.xlu1 %4347, %v4888_v49   ;;  %v4176_v30 = vpop.permute.xlu1 %4175  ;;  %v4360_v52 = vpop.permute.xlu0 %4359 }
  0xce   : > { %v5168_v9 = vadd.f32 %v1044_v19, %v720_v29  ;;  %v5170_v22 = vadd.f32 %v1045_v56, %v721_v35  ;;  %v4178_v63 = vunpack.i.h.bf16 %v4176_v30  ;;  %v4177_v21 = vunpack.i.l.bf16 %v4176_v30 }
  0xcf   : > { %v4362_v41 = vunpack.i.h.bf16 %v4360_v52  ;;  %v4361_v44 = vunpack.i.l.bf16 %v4360_v52  ;;  %v5969_v52 = vmov 2  }
  0xd0   : > { %5963 = vst [vmem:[#allocation12_spill] sm:$0xff] %v5168_v9  ;;  %5964 = vst [vmem:[#allocation13_spill] sm:$0xff] %v5170_v22  ;;  %v1409_v49 = vmul.f32 %v4178_v63, %v5166_v42  ;;  %v1408_v18 = vmul.f32 %v4177_v21, %v5166_v42 }
  0xd1   : > { %v1049_v29 = vmul.f32 %v4362_v41, %v5099_v28  ;;  %v1048_v35 = vmul.f32 %v4361_v44, %v5099_v28  ;;  %4363 = vset.pattern.permute.xlu1 %v5962_v10  ;;  %v5181_v56 = vpop.permute.xlu0 %4387  ;;  %v261_v41 = vld [vmem:[%s4815_s21 + $0x1d8] sm:$0xff] }
  0xd2   : > { %5965 = vst [vmem:[#allocation14_spill] sm:$0xff] %v5181_v56  ;;  %4365 = vperm.xlu1 %4363, %v4894_v51   ;;  %v4182_v60 = vpop.permute.xlu1 %4181  ;;  %v1472_v19 = vadd.f32 %v1408_v18, %v1084_v43  ;;  %v1473_v30 = vadd.f32 %v1409_v49, %v1085_v45  ;;  %v4064_v43 = vunpack.i.l.bf16 %v5008_v15  ;;  %v4070_v45 = vunpack.i.h.bf16 %v5015_v20 }
  0xd3   : > { %v5184_v59 = vadd.f32 %v1048_v35, %v724_v16  ;;  %v5186_v1 = vadd.f32 %v1049_v29, %v725_v14  ;;  %v4184_v39 = vunpack.i.h.bf16 %v4182_v60  ;;  %v4183_v53 = vunpack.i.l.bf16 %v4182_v60  ;;  %v260_v14 = vld [vmem:[%s4815_s21 + $0x1d0] sm:$0xff] }
  0xd4   : > { %v4069_v49 = vunpack.i.l.bf16 %v5015_v20  ;;  %v4059_v20 = vunpack.i.h.bf16 %v5019_v25 }
  0xd5   : > { %5966 = vst [vmem:[#allocation15_spill] sm:$0xff] %v5184_v59  ;;  %5967 = vst [vmem:[#allocation16_spill] sm:$0xff] %v5186_v1  ;;  %v1797_v11 = vmul.f32 %v4184_v39, %v5174_v48  ;;  %v1796_v50 = vmul.f32 %v4183_v53, %v5174_v48  ;;  %v5190_v44 = vpop.permute.xlu0 %4415  ;;  %v4065_v39 = vunpack.i.h.bf16 %v5008_v15  ;;  %v5213_v15 = vpack.i.bf16 %v261_v41, %v260_v14 }
  0xd6   : > { %5968 = vst [vmem:[#allocation17_spill] sm:$0xff] %v5190_v44  ;;  %4369 = vset.pattern.permute.xlu1 %v5969_v52  ;;  %v5193_v63 = vpop.permute.xlu1 %4186 }
  0xd7   : > { %4371 = vperm.xlu1 %4369, %v4899_v54   ;;  %v1860_v21 = vadd.f32 %v1796_v50, %v1472_v19  ;;  %v1861_v16 = vadd.f32 %v1797_v11, %v1473_v30  ;;  %v4058_v11 = vunpack.i.l.bf16 %v5019_v25  ;;  %v4194_v50 = vunpack.i.h.bf16 %v5074_v57  ;;  %5972 = vst [vmem:[#allocation20_spill] sm:$0xff] %v5213_v15  ;;  %4692 = vperm.xlu0 %4685, %v5213_v15  }
  0xd8   : > { %v4193_v19 = vunpack.i.l.bf16 %v5074_v57  ;;  %v4171_v30 = vunpack.i.l.bf16 %v5141_v34  ;;  %v703_v57 = vmul.f32 %v4070_v45, %v5094_v46  ;;  %v699_v45 = vmul.f32 %v4059_v20, %v5094_v46 }
  0xd9   : > { %v5198_v29 = vpop.permute.xlu0 %4443  ;;  %v1924_v35 = vmax.f32 %v1860_v21, 0.0  ;;  %v1925_v60 = vmax.f32 %v1861_v16, 0.0  ;;  %v4172_v16 = vunpack.i.h.bf16 %v5141_v34 }
  0xda   : > { %5970 = vst [vmem:[#allocation18_spill] sm:$0xff] %v5198_v29  ;;  %v702_v29 = vmul.f32 %v4069_v49, %v5094_v46  ;;  %v1024_v14 = vmul.f32 %v4193_v19, %v5099_v28  ;;  %v1022_v25 = vmul.f32 %v4171_v30, %v5099_v28  ;;  %v4074_v19 = vunpack.i.l.bf16 %v5025_v33 }
  0xdb   : > { %4375 = vset.pattern.permute.xlu1 %v5961_v7  ;;  %v4198_v18 = vpop.permute.xlu1 %4197  ;;  %v1988_v53 = vpack.c.bf16 %v1925_v60, %v1924_v35  ;;  %v701_v35 = vmul.f32 %v4065_v39, %v5094_v46  ;;  %v700_v60 = vmul.f32 %v4064_v43, %v5094_v46  ;;  %v4222_v30 = vunpack.i.h.bf16 %v5085_v6 }
  0xdc   : > { %4377 = vperm.xlu1 %4375, %v4899_v54   ;;  %v698_v54 = vmul.f32 %v4058_v11, %v5094_v46  ;;  %v4200_v41 = vunpack.i.h.bf16 %v4198_v18  ;;  %v1023_v11 = vmul.f32 %v4172_v16, %v5099_v28  ;;  %v4199_v44 = vunpack.i.l.bf16 %v4198_v18 }
  0xdd   : > { %v5210_v21 = vpop.permute.xlu0 %4471  ;;  %3821 = vmatprep.mubr.msk.bf16.mxu0 %vm2052_vm0, %v1988_v53  ;;  %v1025_v53 = vmul.f32 %v4194_v50, %v5099_v28  ;;  %v4189_v50 = vunpack.i.h.bf16 %v5193_v63  ;;  %v1088_v16 = vadd.f32 %v1024_v14, %v700_v60  ;;  %v263_v60 = vld [vmem:[%s4815_s21 + $0x1e8] sm:$0xff] }
  0xde   : > { %5971 = vst [vmem:[#allocation19_spill] sm:$0xff] %v5210_v21  ;;  %v1086_v49 = vadd.f32 %v1022_v25, %v698_v54  ;;  %v1027_v15 = vmul.f32 %v4200_v41, %v5099_v28 }
  0xdf   : > { %v1089_v56 = vadd.f32 %v1025_v53, %v701_v35  ;;  %v1799_v18 = vmul.f32 %v4189_v50, %v5174_v48 }
  0xe0   : > { %4382 = vperm.xlu1 %4375, %v4894_v51   ;;  %v4204_v34 = vpop.permute.xlu1 %4203  ;;  %v4188_v51 = vunpack.i.l.bf16 %v5193_v63  ;;  %v1087_v63 = vadd.f32 %v1023_v11, %v699_v45  ;;  %v1091_v45 = vadd.f32 %v1027_v15, %v703_v57 }
  0xe1   : > { %v4206_v39 = vunpack.i.h.bf16 %v4204_v34  ;;  %v4205_v43 = vunpack.i.l.bf16 %v4204_v34  ;;  %v5227_v21 = vpop.permute.xlu0 %4499 }
  0xe2   : > { %5973 = vst [vmem:[#allocation21_spill] sm:$0xff] %v5227_v21 }
  0xe3   : > { %v1413_v21 = vmul.f32 %v4206_v39, %v5166_v42  ;;  %v1412_v20 = vmul.f32 %v4205_v43, %v5166_v42  ;;  %v1798_v39 = vmul.f32 %v4188_v51, %v5174_v48  ;;  %v1026_v43 = vmul.f32 %v4199_v44, %v5099_v28 }
  0xe4   : > { %4391 = vset.pattern.permute.xlu1 %v5962_v10 }
  0xe5   : > { %4393 = vperm.xlu1 %4391, %v4901_v55   ;;  %v4210_v1 = vpop.permute.xlu1 %4209  ;;  %v1476_v54 = vadd.f32 %v1412_v20, %v1088_v16  ;;  %v1477_v14 = vadd.f32 %v1413_v21, %v1089_v56 }
  0xe6   : > { %v4212_v35 = vunpack.i.h.bf16 %v4210_v1  ;;  %v4211_v53 = vunpack.i.l.bf16 %v4210_v1  ;;  %v4506_v34 = vpop.permute.xlu0 %4505 }
  0xe7   : > { %v4508_v59 = vunpack.i.h.bf16 %v4506_v34  ;;  %v4507_v40 = vunpack.i.l.bf16 %v4506_v34 }
  0xe8   : > { %v1801_v25 = vmul.f32 %v4212_v35, %v5174_v48  ;;  %v1800_v41 = vmul.f32 %v4211_v53, %v5174_v48  ;;  %v1090_v35 = vadd.f32 %v1026_v43, %v702_v29 }
  0xe9   : > { %v1411_v11 = vmul.f32 %v4508_v59, %v5166_v42  ;;  %v1410_v1 = vmul.f32 %v4507_v40, %v5166_v42  ;;  %4397 = vset.pattern.permute.xlu1 %v5969_v52  ;;  %v4215_v50 = vpop.permute.xlu1 %4214 }
  0xea   : > { %v1864_v51 = vadd.f32 %v1800_v41, %v1476_v54  ;;  %v1865_v44 = vadd.f32 %v1801_v25, %v1477_v14  ;;  %v4217_v22 = vunpack.i.h.bf16 %v4215_v50  ;;  %v4216_v34 = vunpack.i.l.bf16 %v4215_v50  ;;  %v4511_v9 = vpop.permute.xlu0 %4510  ;;  %4399 = vperm.xlu1 %4397, %v4946_v12  }
  0xeb   : > { %v1474_v56 = vadd.f32 %v1410_v1, %v1086_v49  ;;  %v1475_v21 = vadd.f32 %v1411_v11, %v1087_v63  ;;  %v4513_v20 = vunpack.i.h.bf16 %v4511_v9  ;;  %v4512_v16 = vunpack.i.l.bf16 %v4511_v9 }
  0xec   : > { %v1928_v15 = vmax.f32 %v1864_v51, 0.0  ;;  %v1929_v57 = vmax.f32 %v1865_v44, 0.0  ;;  %v1803_v59 = vmul.f32 %v4217_v22, %v5174_v48  ;;  %v1802_v14 = vmul.f32 %v4216_v34, %v5174_v48 }
  0xed   : > { %v1862_v40 = vadd.f32 %v1798_v39, %v1474_v56  ;;  %v1863_v53 = vadd.f32 %v1799_v18, %v1475_v21  ;;  %v1415_v4 = vmul.f32 %v4513_v20, %v5166_v42  ;;  %v1414_v54 = vmul.f32 %v4512_v16, %v5166_v42  ;;  %v265_v21 = vld [vmem:[%s4815_s21 + $0x1f8] sm:$0xff] }
  0xee   : > { %4403 = vset.pattern.permute.xlu1 %v5961_v7  ;;  %v4226_v25 = vpop.permute.xlu1 %4225  ;;  %v5974_v22 = vunpack.i.h.bf16 %v5025_v33  ;;  %v704_v18 = vmul.f32 %v4074_v19, %v5094_v46  ;;  %v1029_v39 = vmul.f32 %v4222_v30, %v5099_v28  ;;  %v4516_v1 = vpop.permute.xlu0 %4515  ;;  %v5264_v51 = vpack.i.bf16 %v263_v60, %v262_v13 }
  0xef   : > { %v1926_v49 = vmax.f32 %v1862_v40, 0.0  ;;  %v1927_v63 = vmax.f32 %v1863_v53, 0.0  ;;  %v1479_v41 = vadd.f32 %v1415_v4, %v1091_v45  ;;  %v1478_v9 = vadd.f32 %v1414_v54, %v1090_v35  ;;  %4405 = vperm.xlu1 %4403, %v4946_v12  }
  0xf0   : > { %v705_v29 = vmul.f32 %v5974_v22, %v5094_v46  ;;  %v5975_v4 = vunpack.i.l.bf16 %v5085_v6  ;;  %v4228_v45 = vunpack.i.h.bf16 %v4226_v25  ;;  %v4227_v44 = vunpack.i.l.bf16 %v4226_v25  ;;  %4709 = vperm.xlu0 %4685, %v5264_v51   ;;  %v264_v6 = vld [vmem:[%s4815_s21 + $0x1f0] sm:$0xff] }
  0xf1   : > { %v1867_v43 = vadd.f32 %v1803_v59, %v1479_v41  ;;  %v1866_v11 = vadd.f32 %v1802_v14, %v1478_v9  ;;  %v1989_v50 = vpack.c.bf16 %v1927_v63, %v1926_v49  ;;  %v1990_v33 = vpack.c.bf16 %v1929_v57, %v1928_v15 }
  0xf2   : > { %v1028_v12 = vmul.f32 %v5975_v4, %v5099_v28  ;;  %v4080_v34 = vunpack.i.h.bf16 %v5021_v26  ;;  %v4079_v30 = vunpack.i.l.bf16 %v5021_v26  ;;  %v4518_v56 = vunpack.i.h.bf16 %v4516_v1 }
  0xf3   : > { %3822 = vmatmul.mubr.msk.bf16.vlgmr.msra.gmra.mxu0 %vm2052_vm0, %v1989_v50  ;;  %4410 = vperm.xlu1 %4403, %v4901_v55   ;;  %v4232_v19 = vpop.permute.xlu1 %4231  ;;  %v1931_v20 = vmax.f32 %v1867_v43, 0.0  ;;  %v1930_v16 = vmax.f32 %v1866_v11, 0.0  ;;  %v4517_v35 = vunpack.i.l.bf16 %v4516_v1  ;;  %v1093_v57 = vadd.f32 %v1029_v39, %v705_v29 }
  0xf4   : > { %v4234_v13 = vunpack.i.h.bf16 %v4232_v19  ;;  %v4233_v60 = vunpack.i.l.bf16 %v4232_v19  ;;  %3825 = vmatprep.mubr.msk.bf16.mxu0 %vm2052_vm0, %v1990_v33  ;;  %v1092_v15 = vadd.f32 %v1028_v12, %v704_v18  ;;  %v1031_v59 = vmul.f32 %v4228_v45, %v5099_v28  ;;  %4724 = vset.pattern.permute.xlu0 %v5969_v52 }
  0xf5   : > { %v1030_v55 = vmul.f32 %v4227_v44, %v5099_v28  ;;  %v707_v53 = vmul.f32 %v4080_v34, %v5094_v46  ;;  %v706_v54 = vmul.f32 %v4079_v30, %v5094_v46  ;;  %v1419_v14 = vmul.f32 %v4518_v56, %v5166_v42  ;;  %4726 = vperm.xlu0 %4724, %v5264_v51  }
  0xf6   : > { %v1417_v26 = vmul.f32 %v4234_v13, %v5166_v42  ;;  %v1416_v40 = vmul.f32 %v4233_v60, %v5166_v42  ;;  %v1418_v49 = vmul.f32 %v4517_v35, %v5166_v42  ;;  %v1991_v9 = vpack.c.bf16 %v1931_v20, %v1930_v16 }
  0xf7   : > { %4419 = vset.pattern.permute.xlu1 %v5962_v10  ;;  %v1095_v22 = vadd.f32 %v1031_v59, %v707_v53  ;;  %v1094_v29 = vadd.f32 %v1030_v55, %v706_v54  ;;  %v5293_v50 = vpack.i.bf16 %v265_v21, %v264_v6  ;;  %v4521_v55 = vpop.permute.xlu0 %4520  ;;  %v4089_v53 = vunpack.i.l.bf16 %v5028_v32 }
  0xf8   : > { %4421 = vperm.xlu1 %4419, %v4907_v58   ;;  %v4238_v25 = vpop.permute.xlu1 %4237  ;;  %v1480_v18 = vadd.f32 %v1416_v40, %v1092_v15  ;;  %v1481_v39 = vadd.f32 %v1417_v26, %v1093_v57  ;;  %v4090_v40 = vunpack.i.h.bf16 %v5028_v32 }
  0xf9   : > { %v4240_v63 = vunpack.i.h.bf16 %v4238_v25  ;;  %v4239_v41 = vunpack.i.l.bf16 %v4238_v25  ;;  %4742 = vset.pattern.permute.xlu0 %v5961_v7  ;;  %v1483_v33 = vadd.f32 %v1419_v14, %v1095_v22  ;;  %v1482_v34 = vadd.f32 %v1418_v49, %v1094_v29 }
  0xfa   : > { %4744 = vperm.xlu0 %4742, %v5293_v50   ;;  %v4523_v49 = vunpack.i.h.bf16 %v4521_v55  ;;  %v710_v32 = vmul.f32 %v4089_v53, %v5094_v46 }
  0xfb   : > { %v1805_v43 = vmul.f32 %v4240_v63, %v5174_v48  ;;  %v1804_v11 = vmul.f32 %v4239_v41, %v5174_v48  ;;  %3826 = vmatmul.mubr.msk.bf16.gmra.mxu0 %vm2052_vm0, %v1991_v9  ;;  %v4522_v63 = vunpack.i.l.bf16 %v4521_v55  ;;  %v4526_v53 = vpop.permute.xlu0 %4525 }
  0xfc   : > { %4425 = vset.pattern.permute.xlu1 %v5969_v52  ;;  %v4243_v1 = vpop.permute.xlu1 %4242 }
  0xfd   : > { %v1868_v4 = vadd.f32 %v1804_v11, %v1480_v18  ;;  %v1869_v12 = vadd.f32 %v1805_v43, %v1481_v39  ;;  %v4245_v45 = vunpack.i.h.bf16 %v4243_v1  ;;  %v4244_v44 = vunpack.i.l.bf16 %v4243_v1  ;;  %4427 = vperm.xlu1 %4425, %v4952_v17  }
  0xfe   : > { %v1423_v11 = vmul.f32 %v4523_v49, %v5166_v42  ;;  %v1422_v1 = vmul.f32 %v4522_v63, %v5166_v42 }
  0xff   : > { %v1932_v19 = vmax.f32 %v1868_v4, 0.0  ;;  %v1933_v30 = vmax.f32 %v1869_v12, 0.0  ;;  %v1807_v56 = vmul.f32 %v4245_v45, %v5174_v48  ;;  %v1806_v13 = vmul.f32 %v4244_v44, %v5174_v48 }
 0x101   : > { %v1870_v60 = vadd.f32 %v1806_v13, %v1482_v34  ;;  %v1871_v20 = vadd.f32 %v1807_v56, %v1483_v33  ;;  %4431 = vset.pattern.permute.xlu1 %v5961_v7  ;;  %v4254_v6 = vpop.permute.xlu1 %4253  ;;  %v1992_v21 = vpack.c.bf16 %v1933_v30, %v1932_v19 }
 0x102   : > { %4433 = vperm.xlu1 %4431, %v4952_v17   ;;  %v4256_v15 = vunpack.i.h.bf16 %v4254_v6  ;;  %v4255_v57 = vunpack.i.l.bf16 %v4254_v6 }
 0x103   : > { %v1934_v16 = vmax.f32 %v1870_v60, 0.0  ;;  %v1935_v35 = vmax.f32 %v1871_v20, 0.0  ;;  %3829 = vmatprep.mubr.msk.bf16.mxu0 %vm2052_vm0, %v1992_v21 }
 0x104   : > { %v1035_v17 = vmul.f32 %v4256_v15, %v5099_v28  ;;  %v1034_v25 = vmul.f32 %v4255_v57, %v5099_v28 }
 0x105   : > { %v1993_v59 = vpack.c.bf16 %v1935_v35, %v1934_v16 }
 0x106   : > { %4438 = vperm.xlu1 %4431, %v4907_v58   ;;  %v4260_v26 = vpop.permute.xlu1 %4259  ;;  %v711_v58 = vmul.f32 %v4090_v40, %v5094_v46  ;;  %v1098_v43 = vadd.f32 %v1034_v25, %v710_v32 }
 0x107   : > { %v4262_v54 = vunpack.i.h.bf16 %v4260_v26  ;;  %v4261_v14 = vunpack.i.l.bf16 %v4260_v26  ;;  %3830 = vmatmul.mubr.msk.bf16.gmra.mxu0 %vm2052_vm0, %v1993_v59 }
 0x108   : > { %v1099_v39 = vadd.f32 %v1035_v17, %v711_v58  ;;  %v1486_v60 = vadd.f32 %v1422_v1, %v1098_v43  ;;  %v4099_v17 = vunpack.i.l.bf16 %v5033_v31 }
 0x109   : > { %v1421_v41 = vmul.f32 %v4262_v54, %v5166_v42  ;;  %v1420_v9 = vmul.f32 %v4261_v14, %v5166_v42  ;;  %v4100_v14 = vunpack.i.h.bf16 %v5033_v31 }
 0x10a   : > { %4447 = vset.pattern.permute.xlu1 %v5962_v10  ;;  %v1487_v13 = vadd.f32 %v1423_v11, %v1099_v39  ;;  %v714_v31 = vmul.f32 %v4099_v17, %v5094_v46 }
 0x10b   : > { %4449 = vperm.xlu1 %4447, %v4915_v62   ;;  %v4266_v22 = vpop.permute.xlu1 %4265  ;;  %v1484_v4 = vadd.f32 %v1420_v9, %v5115_v0  ;;  %v1485_v12 = vadd.f32 %v1421_v41, %v5117_v61  ;;  %v4528_v41 = vunpack.i.h.bf16 %v4526_v53  ;;  %v4527_v9 = vunpack.i.l.bf16 %v4526_v53 }
 0x10c   : > { %v4268_v29 = vunpack.i.h.bf16 %v4266_v22  ;;  %v4267_v18 = vunpack.i.l.bf16 %v4266_v22 }
 0x10d   : > { %v1427_v11 = vmul.f32 %v4528_v41, %v5166_v42  ;;  %v1426_v1 = vmul.f32 %v4527_v9, %v5166_v42 }
 0x10e   : > { %v1809_v45 = vmul.f32 %v4268_v29, %v5174_v48  ;;  %v1808_v44 = vmul.f32 %v4267_v18, %v5174_v48 }
 0x10f   : > { %4453 = vset.pattern.permute.xlu1 %v5969_v52  ;;  %v4271_v33 = vpop.permute.xlu1 %4270 }
 0x110   : > { %v1872_v34 = vadd.f32 %v1808_v44, %v1484_v4  ;;  %v1873_v19 = vadd.f32 %v1809_v45, %v1485_v12  ;;  %v4273_v30 = vunpack.i.h.bf16 %v4271_v33  ;;  %v4272_v56 = vunpack.i.l.bf16 %v4271_v33  ;;  %4455 = vperm.xlu1 %4453, %v4958_v23  }
 0x112   : > { %v1936_v20 = vmax.f32 %v1872_v34, 0.0  ;;  %v1937_v6 = vmax.f32 %v1873_v19, 0.0  ;;  %v1811_v0 = vmul.f32 %v4273_v30, %v5174_v48  ;;  %v1810_v61 = vmul.f32 %v4272_v56, %v5174_v48 }
 0x114   : > { %v1874_v21 = vadd.f32 %v1810_v61, %v1486_v60  ;;  %v1875_v16 = vadd.f32 %v1811_v0, %v1487_v13  ;;  %4459 = vset.pattern.permute.xlu1 %v5961_v7  ;;  %v4282_v35 = vpop.permute.xlu1 %4281  ;;  %v1994_v15 = vpack.c.bf16 %v1937_v6, %v1936_v20 }
 0x115   : > { %4461 = vperm.xlu1 %4459, %v4958_v23   ;;  %v4284_v55 = vunpack.i.h.bf16 %v4282_v35  ;;  %v4283_v26 = vunpack.i.l.bf16 %v4282_v35 }
 0x116   : > { %v1938_v57 = vmax.f32 %v1874_v21, 0.0  ;;  %v1939_v59 = vmax.f32 %v1875_v16, 0.0  ;;  %3833 = vmatprep.mubr.msk.bf16.mxu0 %vm2052_vm0, %v1994_v15 }
 0x117   : > { %v1039_v23 = vmul.f32 %v4284_v55, %v5099_v28  ;;  %v1038_v63 = vmul.f32 %v4283_v26, %v5099_v28  ;;  %v4110_v26 = vunpack.i.h.bf16 %v5037_v36 }
 0x118   : > { %v1995_v40 = vpack.c.bf16 %v1939_v59, %v1938_v57 }
 0x119   : > { %4466 = vperm.xlu1 %4459, %v4915_v62   ;;  %v4288_v54 = vpop.permute.xlu1 %4287  ;;  %v715_v62 = vmul.f32 %v4100_v14, %v5094_v46  ;;  %v1102_v43 = vadd.f32 %v1038_v63, %v714_v31 }
 0x11a   : > { %v4290_v25 = vunpack.i.h.bf16 %v4288_v54  ;;  %v4289_v49 = vunpack.i.l.bf16 %v4288_v54  ;;  %3834 = vmatmul.mubr.msk.bf16.gmra.mxu0 %vm2052_vm0, %v1995_v40  ;;  %v4531_v40 = vpop.permute.xlu0 %4530  ;;  %v4109_v54 = vunpack.i.l.bf16 %v5037_v36 }
 0x11b   : > { %v1103_v39 = vadd.f32 %v1039_v23, %v715_v62  ;;  %v1490_v60 = vadd.f32 %v1426_v1, %v1102_v43 }
 0x11c   : > { %v1425_v58 = vmul.f32 %v4290_v25, %v5166_v42  ;;  %v1424_v32 = vmul.f32 %v4289_v49, %v5166_v42  ;;  %v4532_v25 = vunpack.i.l.bf16 %v4531_v40  ;;  %v718_v36 = vmul.f32 %v4109_v54, %v5094_v46 }
 0x11d   : > { %4475 = vset.pattern.permute.xlu1 %v5962_v10  ;;  %v1491_v13 = vadd.f32 %v1427_v11, %v1103_v39 }
 0x11e   : > { %4477 = vperm.xlu1 %4475, %v4921_v2   ;;  %v4294_v22 = vpop.permute.xlu1 %4293  ;;  %v1488_v4 = vadd.f32 %v1424_v32, %v5132_v5  ;;  %v1489_v12 = vadd.f32 %v1425_v58, %v5134_v8  ;;  %v4536_v58 = vpop.permute.xlu0 %4535 }
 0x11f   : > { %v4296_v29 = vunpack.i.h.bf16 %v4294_v22  ;;  %v4295_v18 = vunpack.i.l.bf16 %v4294_v22  ;;  %v1430_v22 = vmul.f32 %v4532_v25, %v5166_v42  ;;  %v5976_v25 = vld [vmem:[#allocation2_spill] sm:$0xff] }
 0x121   : > { %v1813_v45 = vmul.f32 %v4296_v29, %v5174_v48  ;;  %v1812_v44 = vmul.f32 %v4295_v18, %v5174_v48 }
 0x122   : > { %4481 = vset.pattern.permute.xlu1 %v5969_v52  ;;  %v4299_v33 = vpop.permute.xlu1 %4298 }
 0x123   : > { %v1876_v34 = vadd.f32 %v1812_v44, %v1488_v4  ;;  %v1877_v19 = vadd.f32 %v1813_v45, %v1489_v12  ;;  %v4301_v30 = vunpack.i.h.bf16 %v4299_v33  ;;  %v4300_v56 = vunpack.i.l.bf16 %v4299_v33  ;;  %4483 = vperm.xlu1 %4481, %v4962_v24  }
 0x125   : > { %v1940_v20 = vmax.f32 %v1876_v34, 0.0  ;;  %v1941_v6 = vmax.f32 %v1877_v19, 0.0  ;;  %v1815_v5 = vmul.f32 %v4301_v30, %v5174_v48  ;;  %v1814_v8 = vmul.f32 %v4300_v56, %v5174_v48  ;;  %v5373_v30 = vpop.permute.xlu0 %4540 }
 0x127   : > { %v1878_v0 = vadd.f32 %v1814_v8, %v1490_v60  ;;  %v1879_v61 = vadd.f32 %v1815_v5, %v1491_v13  ;;  %4487 = vset.pattern.permute.xlu1 %v5961_v7  ;;  %v4310_v21 = vpop.permute.xlu1 %4309  ;;  %v1996_v16 = vpack.c.bf16 %v1941_v6, %v1940_v20 }
 0x128   : > { %4489 = vperm.xlu1 %4487, %v4962_v24   ;;  %v4312_v57 = vunpack.i.h.bf16 %v4310_v21  ;;  %v4311_v59 = vunpack.i.l.bf16 %v4310_v21  ;;  %v4533_v24 = vunpack.i.h.bf16 %v4531_v40  ;;  %v4537_v40 = vunpack.i.l.bf16 %v4536_v58 }
 0x129   : > { %v1942_v35 = vmax.f32 %v1878_v0, 0.0  ;;  %v1943_v15 = vmax.f32 %v1879_v61, 0.0  ;;  %3837 = vmatprep.mubr.msk.bf16.mxu0 %vm2052_vm0, %v1996_v16  ;;  %v5380_v61 = vpop.permute.xlu0 %4545 }
 0x12a   : > { %v1043_v49 = vmul.f32 %v4312_v57, %v5099_v28  ;;  %v1042_v23 = vmul.f32 %v4311_v59, %v5099_v28  ;;  %v1431_v31 = vmul.f32 %v4533_v24, %v5166_v42  ;;  %v4119_v59 = vunpack.i.l.bf16 %v5044_v38 }
 0x12b   : > { %v1997_v55 = vpack.c.bf16 %v1943_v15, %v1942_v35  ;;  %v4120_v15 = vunpack.i.h.bf16 %v5044_v38 }
 0x12c   : > { %4494 = vperm.xlu1 %4487, %v4921_v2   ;;  %v4316_v53 = vpop.permute.xlu1 %4315  ;;  %v719_v2 = vmul.f32 %v4110_v26, %v5094_v46  ;;  %v1106_v18 = vadd.f32 %v1042_v23, %v718_v36  ;;  %v722_v38 = vmul.f32 %v4119_v59, %v5094_v46 }
 0x12d   : > { %v4318_v14 = vunpack.i.h.bf16 %v4316_v53  ;;  %v4317_v17 = vunpack.i.l.bf16 %v4316_v53  ;;  %3838 = vmatmul.mubr.msk.bf16.gmra.mxu0 %vm2052_vm0, %v1997_v55  ;;  %v5393_v24 = vpop.permute.xlu0 %4550 }
 0x12e   : > { %v1107_v29 = vadd.f32 %v1043_v49, %v719_v2  ;;  %v1494_v34 = vadd.f32 %v1430_v22, %v1106_v18  ;;  %v1434_v2 = vmul.f32 %v4537_v40, %v5166_v42 }
 0x12f   : > { %v1429_v63 = vmul.f32 %v4318_v14, %v5166_v42  ;;  %v1428_v41 = vmul.f32 %v4317_v17, %v5166_v42 }
 0x130   : > { %4564 = vset.pattern.permute.xlu1 %v5962_v10  ;;  %v1495_v19 = vadd.f32 %v1431_v31, %v1107_v29 }
 0x131   : > { %4566 = vperm.xlu1 %4564, %v4925_v3   ;;  %v4322_v9 = vpop.permute.xlu1 %4321  ;;  %v1492_v39 = vadd.f32 %v1428_v41, %v5154_v37  ;;  %v1493_v43 = vadd.f32 %v1429_v63, %v5156_v47 }
 0x132   : > { %v4324_v32 = vunpack.i.h.bf16 %v4322_v9  ;;  %v4323_v62 = vunpack.i.l.bf16 %v4322_v9 }
 0x134   : > { %v1817_v11 = vmul.f32 %v4324_v32, %v5174_v48  ;;  %v1816_v1 = vmul.f32 %v4323_v62, %v5174_v48  ;;  %v5978_v62 = vld [vmem:[#allocation13_spill] sm:$0xff] }
 0x135   : > { %4570 = vset.pattern.permute.xlu1 %v5969_v52  ;;  %v4327_v4 = vpop.permute.xlu1 %4326 }
 0x136   : > { %v1880_v12 = vadd.f32 %v1816_v1, %v1492_v39  ;;  %v1881_v45 = vadd.f32 %v1817_v11, %v1493_v43  ;;  %v4329_v44 = vunpack.i.h.bf16 %v4327_v4  ;;  %v4328_v33 = vunpack.i.l.bf16 %v4327_v4  ;;  %4572 = vperm.xlu1 %4570, %v4967_v27   ;;  %v5979_v4 = vld [vmem:[#allocation8_spill] sm:$0xff] }
 0x138   : > { %v1944_v37 = vmax.f32 %v1880_v12, 0.0  ;;  %v1945_v56 = vmax.f32 %v1881_v45, 0.0  ;;  %v1819_v47 = vmul.f32 %v4329_v44, %v5174_v48  ;;  %v1818_v13 = vmul.f32 %v4328_v33, %v5174_v48  ;;  %v5404_v12 = vpop.permute.xlu0 %4555 }
 0x13a   : > { %v1882_v60 = vadd.f32 %v1818_v13, %v1494_v34  ;;  %v1883_v20 = vadd.f32 %v1819_v47, %v1495_v19  ;;  %4581 = vset.pattern.permute.xlu1 %v5961_v7  ;;  %v4338_v6 = vpop.permute.xlu1 %4337  ;;  %v1998_v5 = vpack.c.bf16 %v1945_v56, %v1944_v37 }
 0x13b   : > { %4583 = vperm.xlu1 %4581, %v4967_v27   ;;  %v4340_v21 = vunpack.i.h.bf16 %v4338_v6  ;;  %v4339_v16 = vunpack.i.l.bf16 %v4338_v6  ;;  %v4538_v27 = vunpack.i.h.bf16 %v4536_v58  ;;  %v5977_v58 = vld [vmem:[#allocation12_spill] sm:$0xff] }
 0x13c   : > { %v1946_v8 = vmax.f32 %v1882_v60, 0.0  ;;  %v1947_v0 = vmax.f32 %v1883_v20, 0.0  ;;  %3841 = vmatprep.mubr.msk.bf16.mxu0 %vm2052_vm0, %v1998_v5  ;;  %v5411_v5 = vpop.permute.xlu0 %4560 }
 0x13d   : > { %v1047_v53 = vmul.f32 %v4340_v21, %v5099_v28  ;;  %v1046_v54 = vmul.f32 %v4339_v16, %v5099_v28  ;;  %v1435_v41 = vmul.f32 %v4538_v27, %v5166_v42  ;;  %v4542_v27 = vunpack.i.l.bf16 %v5373_v30 }
 0x13e   : > { %v1999_v35 = vpack.c.bf16 %v1947_v0, %v1946_v8 }
 0x13f   : > { %4588 = vperm.xlu1 %4581, %v4925_v3   ;;  %v4344_v57 = vpop.permute.xlu1 %4343  ;;  %v723_v3 = vmul.f32 %v4120_v15, %v5094_v46  ;;  %v1110_v9 = vadd.f32 %v1046_v54, %v722_v38 }
 0x140   : > { %v4346_v55 = vunpack.i.h.bf16 %v4344_v57  ;;  %v4345_v26 = vunpack.i.l.bf16 %v4344_v57  ;;  %3842 = vmatmul.mubr.msk.bf16.gmra.mxu0 %vm2052_vm0, %v1999_v35  ;;  %v5980_v35 = vld [vmem:[#allocation3_spill] sm:$0xff]  ;;  %v5421_v54 = vpop.permute.xlu0 %4577 }
 0x141   : > { %v1111_v36 = vadd.f32 %v1047_v53, %v723_v3  ;;  %v1498_v45 = vadd.f32 %v1434_v2, %v1110_v9  ;;  %v4130_v15 = vunpack.i.h.bf16 %v5980_v35  ;;  %v4129_v57 = vunpack.i.l.bf16 %v5980_v35  ;;  %v5982_v9 = vld [vmem:[#allocation15_spill] sm:$0xff] }
 0x142   : > { %v1433_v14 = vmul.f32 %v4346_v55, %v5166_v42  ;;  %v1432_v17 = vmul.f32 %v4345_v26, %v5166_v42  ;;  %v4543_v26 = vunpack.i.h.bf16 %v5373_v30 }
 0x143   : > { %4592 = vset.pattern.permute.xlu1 %v5962_v10  ;;  %v1499_v44 = vadd.f32 %v1435_v41, %v1111_v36  ;;  %v727_v3 = vmul.f32 %v4130_v15, %v5094_v46  ;;  %v726_v38 = vmul.f32 %v4129_v57, %v5094_v46  ;;  %v1438_v41 = vmul.f32 %v4542_v27, %v5166_v42 }
 0x144   : > { %4594 = vperm.xlu1 %4592, %v5976_v25   ;;  %v4350_v49 = vpop.permute.xlu1 %4349  ;;  %v1496_v32 = vadd.f32 %v1432_v17, %v5977_v58  ;;  %v1497_v31 = vadd.f32 %v1433_v14, %v5978_v62 }
 0x145   : > { %v4352_v23 = vunpack.i.h.bf16 %v4350_v49  ;;  %v4351_v63 = vunpack.i.l.bf16 %v4350_v49 }
 0x147   : > { %v1821_v22 = vmul.f32 %v4352_v23, %v5174_v48  ;;  %v1820_v29 = vmul.f32 %v4351_v63, %v5174_v48  ;;  %v1439_v63 = vmul.f32 %v4543_v26, %v5166_v42 }
 0x148   : > { %4598 = vset.pattern.permute.xlu1 %v5969_v52  ;;  %v4355_v18 = vpop.permute.xlu1 %4354 }
 0x149   : > { %v1884_v39 = vadd.f32 %v1820_v29, %v1496_v32  ;;  %v1885_v43 = vadd.f32 %v1821_v22, %v1497_v31  ;;  %v4357_v11 = vunpack.i.h.bf16 %v4355_v18  ;;  %v4356_v1 = vunpack.i.l.bf16 %v4355_v18  ;;  %4600 = vperm.xlu1 %4598, %v5979_v4   ;;  %v5983_v32 = vld [vmem:[#allocation16_spill] sm:$0xff] }
 0x14a   : > { %v5984_v29 = vmov 0  }
 0x14b   : > { %v1948_v33 = vmax.f32 %v1884_v39, 0.0  ;;  %v1949_v34 = vmax.f32 %v1885_v43, 0.0  ;;  %v1823_v19 = vmul.f32 %v4357_v11, %v5174_v48  ;;  %v1822_v37 = vmul.f32 %v4356_v1, %v5174_v48  ;;  %v5436_v39 = vpop.permute.xlu0 %4605 }
 0x14d   : > { %v1886_v56 = vadd.f32 %v1822_v37, %v1498_v45  ;;  %v1887_v47 = vadd.f32 %v1823_v19, %v1499_v44  ;;  %4640 = vset.pattern.permute.xlu1 %v5961_v7  ;;  %v4366_v13 = vpop.permute.xlu1 %4365  ;;  %v2000_v60 = vpack.c.bf16 %v1949_v34, %v1948_v33  ;;  %v5985_v45 = vld [vmem:[#allocation20_spill] sm:$0xff] }
 0x14e   : > { %4642 = vperm.xlu1 %4640, %v5979_v4   ;;  %v4368_v8 = vunpack.i.h.bf16 %v4366_v13  ;;  %v4367_v0 = vunpack.i.l.bf16 %v4366_v13 }
 0x14f   : > { %v1950_v20 = vmax.f32 %v1886_v56, 0.0  ;;  %v1951_v6 = vmax.f32 %v1887_v47, 0.0  ;;  %3845 = vmatprep.mubr.msk.bf16.mxu0 %vm2052_vm0, %v2000_v60 }
 0x150   : > { %v1051_v40 = vmul.f32 %v4368_v8, %v5099_v28  ;;  %v1050_v53 = vmul.f32 %v4367_v0, %v5099_v28 }
 0x151   : > { %v2001_v21 = vpack.c.bf16 %v1951_v6, %v1950_v20  ;;  %v4612_v6 = vpop.permute.xlu0 %4611 }
 0x152   : > { %4647 = vperm.xlu1 %4640, %v5976_v25   ;;  %v4372_v16 = vpop.permute.xlu1 %4371  ;;  %v5981_v25 = vld [vmem:[#allocation10_spill] sm:$0xff]  ;;  %v1115_v2 = vadd.f32 %v1051_v40, %v727_v3  ;;  %v1114_v36 = vadd.f32 %v1050_v53, %v726_v38  ;;  %v4614_v15 = vunpack.i.h.bf16 %v4612_v6  ;;  %v4613_v57 = vunpack.i.l.bf16 %v4612_v6  ;;  %v5987_v40 = vld [vmem:[#allocation4_spill] sm:$0xff] }
 0x153   : > { %v4374_v59 = vunpack.i.h.bf16 %v4372_v16  ;;  %v4373_v55 = vunpack.i.l.bf16 %v4372_v16  ;;  %3846 = vmatmul.mubr.msk.bf16.gmra.mxu0 %vm2052_vm0, %v2001_v21  ;;  %v5986_v21 = vld [vmem:[#allocation14_spill] sm:$0xff]  ;;  %v4135_v53 = vunpack.i.h.bf16 %v5987_v40 }
 0x154   : > { %v1502_v44 = vadd.f32 %v1438_v41, %v1114_v36  ;;  %v1503_v33 = vadd.f32 %v1439_v63, %v1115_v2  ;;  %v4390_v16 = vunpack.i.h.bf16 %v5986_v21  ;;  %v4389_v35 = vunpack.i.l.bf16 %v5986_v21 }
 0x155   : > { %v1437_v14 = vmul.f32 %v4374_v59, %v5166_v42  ;;  %v1436_v17 = vmul.f32 %v4373_v55, %v5166_v42  ;;  %v4547_v63 = vunpack.i.l.bf16 %v5380_v61 }
 0x156   : > { %4656 = vset.pattern.permute.xlu1 %v5962_v10  ;;  %v1053_v38 = vmul.f32 %v4390_v16, %v5099_v28 }
 0x157   : > { %4658 = vperm.xlu1 %4656, %v5981_v25   ;;  %v4378_v49 = vpop.permute.xlu1 %4377  ;;  %v1500_v58 = vadd.f32 %v1436_v17, %v5982_v9  ;;  %v1501_v62 = vadd.f32 %v1437_v14, %v5983_v32  ;;  %v4134_v14 = vunpack.i.l.bf16 %v5987_v40 }
 0x158   : > { %v4380_v30 = vunpack.i.h.bf16 %v4378_v49  ;;  %v4379_v23 = vunpack.i.l.bf16 %v4378_v49  ;;  %v729_v49 = vmul.f32 %v4614_v15, %v5094_v46 }
 0x159   : > { %v730_v32 = vmul.f32 %v4134_v14, %v5094_v46 }
 0x15a   : > { %v1825_v31 = vmul.f32 %v4380_v30, %v5174_v48  ;;  %v1824_v22 = vmul.f32 %v4379_v23, %v5174_v48  ;;  %v728_v30 = vmul.f32 %v4613_v57, %v5094_v46  ;;  %v4548_v23 = vunpack.i.h.bf16 %v5380_v61  ;;  %v4617_v57 = vpop.permute.xlu0 %4616 }
 0x15b   : > { %4662 = vset.pattern.permute.xlu1 %v5984_v29  ;;  %v4383_v18 = vpop.permute.xlu1 %4382  ;;  %v4618_v14 = vunpack.i.l.bf16 %v4617_v57 }
 0x15c   : > { %v1888_v43 = vadd.f32 %v1824_v22, %v1500_v58  ;;  %v1889_v11 = vadd.f32 %v1825_v31, %v1501_v62  ;;  %v4385_v1 = vunpack.i.h.bf16 %v4383_v18  ;;  %v4384_v4 = vunpack.i.l.bf16 %v4383_v18  ;;  %4664 = vperm.xlu1 %4662, %v5985_v45  }
 0x15d   : > { %v731_v58 = vmul.f32 %v4135_v53, %v5094_v46  ;;  %v1117_v22 = vadd.f32 %v1053_v38, %v729_v49  ;;  %v4619_v53 = vunpack.i.h.bf16 %v4617_v57  ;;  %v5989_v49 = vld [vmem:[#allocation5_spill] sm:$0xff] }
 0x15e   : > { %v1952_v34 = vmax.f32 %v1888_v43, 0.0  ;;  %v1953_v19 = vmax.f32 %v1889_v11, 0.0  ;;  %v1827_v37 = vmul.f32 %v4385_v1, %v5174_v48  ;;  %v1826_v56 = vmul.f32 %v4384_v4, %v5174_v48 }
 0x15f   : > { %v1443_v43 = vmul.f32 %v4548_v23, %v5166_v42  ;;  %v1442_v11 = vmul.f32 %v4547_v63, %v5166_v42  ;;  %v4139_v23 = vunpack.i.l.bf16 %v5989_v49 }
 0x160   : > { %v1890_v47 = vadd.f32 %v1826_v56, %v1502_v44  ;;  %v1891_v13 = vadd.f32 %v1827_v37, %v1503_v33  ;;  %4668 = vset.pattern.permute.xlu1 %v5969_v52  ;;  %v4394_v60 = vpop.permute.xlu1 %4393  ;;  %v2002_v20 = vpack.c.bf16 %v1953_v19, %v1952_v34 }
 0x161   : > { %4670 = vperm.xlu1 %4668, %v5981_v25   ;;  %v4396_v59 = vunpack.i.h.bf16 %v4394_v60  ;;  %v4395_v55 = vunpack.i.l.bf16 %v4394_v60  ;;  %v1052_v25 = vmul.f32 %v4389_v35, %v5099_v28 }
 0x162   : > { %v1954_v8 = vmax.f32 %v1890_v47, 0.0  ;;  %v1955_v0 = vmax.f32 %v1891_v13, 0.0  ;;  %3849 = vmatprep.mubr.msk.bf16.mxu0 %vm2052_vm0, %v2002_v20 }
 0x163   : > { %v1055_v41 = vmul.f32 %v4396_v59, %v5099_v28  ;;  %v1054_v2 = vmul.f32 %v4395_v55, %v5099_v28  ;;  %v1116_v31 = vadd.f32 %v1052_v25, %v728_v30  ;;  %v4140_v30 = vunpack.i.h.bf16 %v5989_v49 }
 0x164   : > { %v2003_v26 = vpack.c.bf16 %v1955_v0, %v1954_v8 }
 0x165   : > { %4675 = vperm.xlu1 %4668, %v5985_v45   ;;  %v4400_v27 = vpop.permute.xlu1 %4399  ;;  %v1119_v1 = vadd.f32 %v1055_v41, %v731_v58  ;;  %v1118_v4 = vadd.f32 %v1054_v2, %v730_v32  ;;  %v4553_v58 = vunpack.i.h.bf16 %v5393_v24  ;;  %v4552_v32 = vunpack.i.l.bf16 %v5393_v24 }
 0x166   : > { %v4402_v17 = vunpack.i.h.bf16 %v4400_v27  ;;  %v4401_v3 = vunpack.i.l.bf16 %v4400_v27  ;;  %3850 = vmatmul.mubr.msk.bf16.gmra.mxu0 %vm2052_vm0, %v2003_v26  ;;  %v5988_v26 = vld [vmem:[#allocation17_spill] sm:$0xff] }
 0x167   : > { %v1506_v60 = vadd.f32 %v1442_v11, %v1118_v4  ;;  %v1507_v20 = vadd.f32 %v1443_v43, %v1119_v1  ;;  %v4418_v27 = vunpack.i.h.bf16 %v5988_v26  ;;  %v4417_v40 = vunpack.i.l.bf16 %v5988_v26 }
 0x168   : > { %v1441_v36 = vmul.f32 %v4402_v17, %v5166_v42  ;;  %v1440_v9 = vmul.f32 %v4401_v3, %v5166_v42  ;;  %v734_v43 = vmul.f32 %v4139_v23, %v5094_v46 }
 0x169   : > { %4696 = vset.pattern.permute.xlu1 %v5961_v7  ;;  %v1057_v2 = vmul.f32 %v4418_v27, %v5099_v28 }
 0x16a   : > { %4698 = vperm.xlu1 %4696, %v5985_v45   ;;  %v4406_v62 = vpop.permute.xlu1 %4405  ;;  %v1504_v44 = vadd.f32 %v1440_v9, %v1116_v31  ;;  %v1505_v33 = vadd.f32 %v1441_v36, %v1117_v22  ;;  %v1056_v36 = vmul.f32 %v4417_v40, %v5099_v28  ;;  %v733_v9 = vmul.f32 %v4619_v53, %v5094_v46  ;;  %v5990_v53 = vld [vmem:[#allocation18_spill] sm:$0xff] }
 0x16b   : > { %v4408_v61 = vunpack.i.h.bf16 %v4406_v62  ;;  %v4407_v18 = vunpack.i.l.bf16 %v4406_v62 }
 0x16c   : > { %v1121_v4 = vadd.f32 %v1057_v2, %v733_v9  ;;  %v5991_v2 = vld [vmem:[#allocation6_spill] sm:$0xff] }
 0x16d   : > { %v1829_v34 = vmul.f32 %v4408_v61, %v5174_v48  ;;  %v1828_v19 = vmul.f32 %v4407_v18, %v5174_v48  ;;  %v735_v18 = vmul.f32 %v4140_v30, %v5094_v46  ;;  %v4144_v9 = vunpack.i.l.bf16 %v5991_v2 }
 0x16e   : > { %4702 = vset.pattern.permute.xlu1 %v5984_v29  ;;  %v4411_v45 = vpop.permute.xlu1 %4410 }
 0x16f   : > { %v4413_v37 = vunpack.i.h.bf16 %v4411_v45  ;;  %v4412_v56 = vunpack.i.l.bf16 %v4411_v45  ;;  %4704 = vperm.xlu1 %4702, %v5264_v51   ;;  %v1892_v47 = vadd.f32 %v1828_v19, %v1504_v44  ;;  %v1893_v13 = vadd.f32 %v1829_v34, %v1505_v33 }
 0x170   : > { %v1447_v33 = vmul.f32 %v4553_v58, %v5166_v42  ;;  %v1446_v34 = vmul.f32 %v4552_v32, %v5166_v42 }
 0x171   : > { %v1831_v6 = vmul.f32 %v4413_v37, %v5174_v48  ;;  %v1830_v8 = vmul.f32 %v4412_v56, %v5174_v48  ;;  %v1956_v0 = vmax.f32 %v1892_v47, 0.0  ;;  %v1957_v21 = vmax.f32 %v1893_v13, 0.0  ;;  %v4752_v13 = vld [vmem:[%s5920_s2 + $0x38] sm:$0xff]  }
 0x172   : > { %3885 = vmatprep.subr.bf16.mxu1 %v4752_v13 }
 0x173   : > { %v1894_v16 = vadd.f32 %v1830_v8, %v1506_v60  ;;  %v1895_v35 = vadd.f32 %v1831_v6, %v1507_v20  ;;  %4714 = vperm.xlu1 %4702, %v5293_v50   ;;  %v4422_v29 = vpop.permute.xlu1 %4421  ;;  %v2004_v15 = vpack.c.bf16 %v1957_v21, %v1956_v0 }
 0x174   : > { %v4424_v17 = vunpack.i.h.bf16 %v4422_v29  ;;  %v4423_v3 = vunpack.i.l.bf16 %v4422_v29 }
 0x175   : > { %v1958_v59 = vmax.f32 %v1894_v16, 0.0  ;;  %v1959_v55 = vmax.f32 %v1895_v35, 0.0  ;;  %3853 = vmatprep.mubr.msk.bf16.mxu1 %vm2052_vm0, %v2004_v15  ;;  %v4753_v15 = vld [vmem:[%s5920_s2 + $0x30] sm:$0xff]  }
 0x176   : > { %v1059_v62 = vmul.f32 %v4424_v17, %v5099_v28  ;;  %v1058_v31 = vmul.f32 %v4423_v3, %v5099_v28  ;;  %v4445_v17 = vunpack.i.l.bf16 %v5990_v53 }
 0x177   : > { %4718 = vset.pattern.permute.xlu1 %v5962_v10  ;;  %v2005_v38 = vpack.c.bf16 %v1959_v55, %v1958_v59  ;;  %v732_v10 = vmul.f32 %v4618_v14, %v5094_v46  ;;  %v4446_v14 = vunpack.i.h.bf16 %v5990_v53 }
 0x178   : > { %4720 = vperm.xlu1 %4718, %v5293_v50   ;;  %v4428_v25 = vpop.permute.xlu1 %4427  ;;  %v1123_v19 = vadd.f32 %v1059_v62, %v735_v18  ;;  %v1122_v45 = vadd.f32 %v1058_v31, %v734_v43  ;;  %v1060_v62 = vmul.f32 %v4445_v17, %v5099_v28  ;;  %v5992_v17 = vld [vmem:[#allocation19_spill] sm:$0xff] }
 0x179   : > { %v4430_v63 = vunpack.i.h.bf16 %v4428_v25  ;;  %v4429_v41 = vunpack.i.l.bf16 %v4428_v25  ;;  %3854 = vmatmul.mubr.msk.bf16.vlgmr.msra.gmra.mxu1 %vm2052_vm0, %v2005_v38  ;;  %v1120_v1 = vadd.f32 %v1056_v36, %v732_v10  ;;  %v4754_v25 = vld [vmem:[%s5920_s2 + $0x28] sm:$0xff]   ;;  %v4145_v36 = vunpack.i.h.bf16 %v5991_v2 }
 0x17a   : > { %v1510_v0 = vadd.f32 %v1446_v34, %v1122_v45  ;;  %v1511_v21 = vadd.f32 %v1447_v33, %v1123_v19  ;;  %3886 = vmatpush3.bf16.msra.mxu1 %v4752_v13  ;;  %v1061_v32 = vmul.f32 %v4446_v14, %v5099_v28  ;;  %v5993_v2 = vld [vmem:[#allocation7_spill] sm:$0xff] }
 0x17b   : > { %v1445_v22 = vmul.f32 %v4430_v63, %v5166_v42  ;;  %v1444_v61 = vmul.f32 %v4429_v41, %v5166_v42  ;;  %3887 = vmatprep.subr.bf16.mxu1 %v4753_v15  ;;  %v4755_v63 = vld [vmem:[%s5920_s2 + $0x20] sm:$0xff]  }
 0x17c   : > { %4730 = vset.pattern.permute.xlu1 %v5969_v52 }
 0x17d   : > { %4732 = vperm.xlu1 %4730, %v5293_v50   ;;  %v4434_v11 = vpop.permute.xlu1 %4433  ;;  %v1508_v37 = vadd.f32 %v1444_v61, %v1120_v1  ;;  %v1509_v56 = vadd.f32 %v1445_v22, %v1121_v4  ;;  %v739_v1 = vmul.f32 %v4145_v36, %v5094_v46  ;;  %v738_v4 = vmul.f32 %v4144_v9, %v5094_v46 }
 0x17e   : > { %v4436_v24 = vunpack.i.h.bf16 %v4434_v11  ;;  %v4435_v44 = vunpack.i.l.bf16 %v4434_v11  ;;  %3888 = vmatpush3.bf16.msra.mxu1 %v4753_v15  ;;  %v4150_v36 = vunpack.i.h.bf16 %v5993_v2  ;;  %v4149_v9 = vunpack.i.l.bf16 %v5993_v2 }
 0x17f   : > { %3889 = vmatprep.subr.bf16.mxu1 %v4754_v25 }
 0x180   : > { %v1833_v52 = vmul.f32 %v4436_v24, %v5174_v48  ;;  %v1832_v47 = vmul.f32 %v4435_v44, %v5174_v48  ;;  %v4558_v24 = vunpack.i.h.bf16 %v5404_v12  ;;  %v4557_v44 = vunpack.i.l.bf16 %v5404_v12 }
 0x181   : > { %4736 = vset.pattern.permute.xlu1 %v5961_v7  ;;  %v4439_v50 = vpop.permute.xlu1 %4438 }
 0x182   : > { %v1896_v60 = vadd.f32 %v1832_v47, %v1508_v37  ;;  %v1897_v20 = vadd.f32 %v1833_v52, %v1509_v56  ;;  %v4441_v6 = vunpack.i.h.bf16 %v4439_v50  ;;  %v4440_v8 = vunpack.i.l.bf16 %v4439_v50  ;;  %4738 = vperm.xlu1 %4736, %v5264_v51   ;;  %v4622_v51 = vpop.permute.xlu0 %4621  ;;  %3890 = vmatpush3.bf16.msra.mxu1 %v4754_v25 }
 0x183   : > { %v4624_v3 = vunpack.i.h.bf16 %v4622_v51  ;;  %v4623_v38 = vunpack.i.l.bf16 %v4622_v51  ;;  %3891 = vmatprep.subr.bf16.mxu1 %v4755_v63 }
 0x184   : > { %v1960_v16 = vmax.f32 %v1896_v60, 0.0  ;;  %v1961_v35 = vmax.f32 %v1897_v20, 0.0  ;;  %v1835_v29 = vmul.f32 %v4441_v6, %v5174_v48  ;;  %v1834_v7 = vmul.f32 %v4440_v8, %v5174_v48 }
 0x185   : > { %v737_v31 = vmul.f32 %v4624_v3, %v5094_v46  ;;  %v736_v22 = vmul.f32 %v4623_v38, %v5094_v46  ;;  %v1451_v20 = vmul.f32 %v4558_v24, %v5166_v42  ;;  %v1450_v6 = vmul.f32 %v4557_v44, %v5166_v42 }
 0x186   : > { %v1898_v57 = vadd.f32 %v1834_v7, %v1510_v0  ;;  %v1899_v59 = vadd.f32 %v1835_v29, %v1511_v21  ;;  %v4450_v55 = vpop.permute.xlu1 %4449  ;;  %v2006_v26 = vpack.c.bf16 %v1961_v35, %v1960_v16  ;;  %3892 = vmatpush3.bf16.msra.mxu1 %v4755_v63  ;;  %v4474_v3 = vunpack.i.h.bf16 %v5992_v17 }
 0x187   : > { %v4452_v49 = vunpack.i.h.bf16 %v4450_v55  ;;  %v4451_v30 = vunpack.i.l.bf16 %v4450_v55  ;;  %v1124_v34 = vadd.f32 %v1060_v62, %v736_v22  ;;  %v1125_v19 = vadd.f32 %v1061_v32, %v737_v31 }
 0x188   : > { %v1962_v27 = vmax.f32 %v1898_v57, 0.0  ;;  %v1963_v40 = vmax.f32 %v1899_v59, 0.0  ;;  %3857 = vmatprep.mubr.msk.bf16.mxu1 %vm2052_vm0, %v2006_v26  ;;  %v4473_v38 = vunpack.i.l.bf16 %v5992_v17  ;;  %v1065_v32 = vmul.f32 %v4474_v3, %v5099_v28  ;;  %v5994_v17 = vld [vmem:[#allocation21_spill] sm:$0xff] }
 0x189   : > { %v1063_v61 = vmul.f32 %v4452_v49, %v5099_v28  ;;  %v1062_v18 = vmul.f32 %v4451_v30, %v5099_v28  ;;  %v4563_v24 = vunpack.i.h.bf16 %v5411_v5  ;;  %v4562_v44 = vunpack.i.l.bf16 %v5411_v5 }
 0x18a   : > { %v2007_v23 = vpack.c.bf16 %v1963_v40, %v1962_v27  ;;  %v4627_v40 = vpop.permute.xlu0 %4626  ;;  %v1064_v62 = vmul.f32 %v4473_v38, %v5099_v28  ;;  %v4502_v3 = vunpack.i.h.bf16 %v5994_v17  ;;  %v4501_v38 = vunpack.i.l.bf16 %v5994_v17 }
 0x18b   : > { %v4456_v41 = vpop.permute.xlu1 %4455  ;;  %v1127_v56 = vadd.f32 %v1063_v61, %v739_v1  ;;  %v1126_v52 = vadd.f32 %v1062_v18, %v738_v4  ;;  %v4629_v25 = vunpack.i.h.bf16 %v4627_v40  ;;  %v4628_v49 = vunpack.i.l.bf16 %v4627_v40 }
 0x18c   : > { %v4458_v10 = vunpack.i.h.bf16 %v4456_v41  ;;  %v4457_v58 = vunpack.i.l.bf16 %v4456_v41  ;;  %3858 = vmatmul.mubr.msk.bf16.gmra.mxu1 %vm2052_vm0, %v2007_v23  ;;  %v743_v1 = vmul.f32 %v4150_v36, %v5094_v46  ;;  %v742_v4 = vmul.f32 %v4149_v9, %v5094_v46  ;;  %v5995_v36 = vld [vmem:[#allocation9_spill] sm:$0xff] }
 0x18d   : > { %v1514_v35 = vadd.f32 %v1450_v6, %v1126_v52  ;;  %v1515_v29 = vadd.f32 %v1451_v20, %v1127_v56  ;;  %v741_v31 = vmul.f32 %v4629_v25, %v5094_v46  ;;  %v740_v22 = vmul.f32 %v4628_v49, %v5094_v46 }
 0x18e   : > { %v1449_v43 = vmul.f32 %v4458_v10, %v5166_v42  ;;  %v1448_v11 = vmul.f32 %v4457_v58, %v5166_v42  ;;  %v1455_v20 = vmul.f32 %v4563_v24, %v5166_v42  ;;  %v1454_v6 = vmul.f32 %v4562_v44, %v5166_v42 }
 0x18f   : > { %v4155_v9 = vunpack.i.h.bf16 %v5995_v36  ;;  %v4580_v44 = vunpack.i.h.bf16 %v5421_v54 }
 0x190   : > { %v4462_v33 = vpop.permute.xlu1 %4461  ;;  %v1512_v47 = vadd.f32 %v1448_v11, %v1124_v34  ;;  %v1513_v50 = vadd.f32 %v1449_v43, %v1125_v19  ;;  %v1128_v34 = vadd.f32 %v1064_v62, %v740_v22  ;;  %v1129_v19 = vadd.f32 %v1065_v32, %v741_v31 }
 0x191   : > { %v4464_v45 = vunpack.i.h.bf16 %v4462_v33  ;;  %v4463_v37 = vunpack.i.l.bf16 %v4462_v33  ;;  %v1069_v62 = vmul.f32 %v4502_v3, %v5099_v28  ;;  %v1068_v31 = vmul.f32 %v4501_v38, %v5099_v28 }
 0x193   : > { %v1837_v13 = vmul.f32 %v4464_v45, %v5174_v48  ;;  %v1836_v60 = vmul.f32 %v4463_v37, %v5174_v48 }
 0x194   : > { %v4467_v8 = vpop.permute.xlu1 %4466 }
 0x195   : > { %v1900_v12 = vadd.f32 %v1836_v60, %v1512_v47  ;;  %v1901_v0 = vadd.f32 %v1837_v13, %v1513_v50  ;;  %v4469_v21 = vunpack.i.h.bf16 %v4467_v8  ;;  %v4468_v16 = vunpack.i.l.bf16 %v4467_v8  ;;  %v4632_v8 = vpop.permute.xlu0 %4631 }
 0x196   : > { %v4634_v25 = vunpack.i.h.bf16 %v4632_v8  ;;  %v4633_v49 = vunpack.i.l.bf16 %v4632_v8  ;;  %v1459_v8 = vmul.f32 %v4580_v44, %v5166_v42 }
 0x197   : > { %v1964_v7 = vmax.f32 %v1900_v12, 0.0  ;;  %v1965_v15 = vmax.f32 %v1901_v0, 0.0  ;;  %v1839_v57 = vmul.f32 %v4469_v21, %v5174_v48  ;;  %v1838_v59 = vmul.f32 %v4468_v16, %v5174_v48 }
 0x198   : > { %v745_v22 = vmul.f32 %v4634_v25, %v5094_v46 }
 0x199   : > { %v1902_v55 = vadd.f32 %v1838_v59, %v1514_v35  ;;  %v1903_v26 = vadd.f32 %v1839_v57, %v1515_v29  ;;  %v4478_v51 = vpop.permute.xlu1 %4477  ;;  %v2008_v27 = vpack.c.bf16 %v1965_v15, %v1964_v7 }
 0x19a   : > { %v4480_v30 = vunpack.i.h.bf16 %v4478_v51  ;;  %v4479_v23 = vunpack.i.l.bf16 %v4478_v51 }
 0x19b   : > { %v1966_v53 = vmax.f32 %v1902_v55, 0.0  ;;  %v1967_v14 = vmax.f32 %v1903_v26, 0.0  ;;  %3861 = vmatprep.mubr.msk.bf16.mxu1 %vm2052_vm0, %v2008_v27  ;;  %v5563_v55 = vpop.permute.xlu0 %4636 }
 0x19c   : > { %v1067_v61 = vmul.f32 %v4480_v30, %v5099_v28  ;;  %v1066_v18 = vmul.f32 %v4479_v23, %v5099_v28  ;;  %v4638_v17 = vunpack.i.l.bf16 %v5563_v55 }
 0x19d   : > { %v2009_v63 = vpack.c.bf16 %v1967_v14, %v1966_v53 }
 0x19e   : > { %v4484_v41 = vpop.permute.xlu1 %4483  ;;  %v1131_v56 = vadd.f32 %v1067_v61, %v743_v1  ;;  %v1130_v52 = vadd.f32 %v1066_v18, %v742_v4  ;;  %v744_v61 = vmul.f32 %v4633_v49, %v5094_v46  ;;  %v747_v4 = vmul.f32 %v4155_v9, %v5094_v46 }
 0x19f   : > { %v4486_v10 = vunpack.i.h.bf16 %v4484_v41  ;;  %v4485_v58 = vunpack.i.l.bf16 %v4484_v41  ;;  %3862 = vmatmul.mubr.msk.bf16.gmra.mxu1 %vm2052_vm0, %v2009_v63  ;;  %v5568_v2 = vpop.permute.xlu0 %4652 }
 0x1a0   : > { %v1518_v35 = vadd.f32 %v1454_v6, %v1130_v52  ;;  %v1519_v29 = vadd.f32 %v1455_v20, %v1131_v56 }
 0x1a1   : > { %v1453_v43 = vmul.f32 %v4486_v10, %v5166_v42  ;;  %v1452_v11 = vmul.f32 %v4485_v58, %v5166_v42  ;;  %v4154_v10 = vunpack.i.l.bf16 %v5995_v36 }
 0x1a3   : > { %v4490_v33 = vpop.permute.xlu1 %4489  ;;  %v1516_v47 = vadd.f32 %v1452_v11, %v1128_v34  ;;  %v1517_v50 = vadd.f32 %v1453_v43, %v1129_v19  ;;  %v746_v24 = vmul.f32 %v4154_v10, %v5094_v46  ;;  %v1132_v19 = vadd.f32 %v1068_v31, %v744_v61  ;;  %v5585_v52 = vpop.permute.xlu0 %4681 }
 0x1a4   : > { %v4492_v45 = vunpack.i.h.bf16 %v4490_v33  ;;  %v4491_v37 = vunpack.i.l.bf16 %v4490_v33  ;;  %v4579_v33 = vunpack.i.l.bf16 %v5421_v54 }
 0x1a6   : > { %v1841_v13 = vmul.f32 %v4492_v45, %v5174_v48  ;;  %v1840_v60 = vmul.f32 %v4491_v37, %v5174_v48  ;;  %v1133_v45 = vadd.f32 %v1069_v62, %v745_v22 }
 0x1a7   : > { %v4495_v12 = vpop.permute.xlu1 %4494 }
 0x1a8   : > { %v1904_v5 = vadd.f32 %v1840_v60, %v1516_v47  ;;  %v1905_v0 = vadd.f32 %v1841_v13, %v1517_v50  ;;  %v4497_v21 = vunpack.i.h.bf16 %v4495_v12  ;;  %v4496_v16 = vunpack.i.l.bf16 %v4495_v12 }
 0x1a9   : > { %v1458_v12 = vmul.f32 %v4579_v33, %v5166_v42 }
 0x1aa   : > { %v1968_v7 = vmax.f32 %v1904_v5, 0.0  ;;  %v1969_v15 = vmax.f32 %v1905_v0, 0.0  ;;  %v1843_v57 = vmul.f32 %v4497_v21, %v5174_v48  ;;  %v1842_v59 = vmul.f32 %v4496_v16, %v5174_v48 }
 0x1ac   : > { %v1906_v26 = vadd.f32 %v1842_v59, %v1518_v35  ;;  %v1907_v51 = vadd.f32 %v1843_v57, %v1519_v29  ;;  %v4567_v27 = vpop.permute.xlu1 %4566  ;;  %v2010_v40 = vpack.c.bf16 %v1969_v15, %v1968_v7 }
 0x1ad   : > { %v4569_v30 = vunpack.i.h.bf16 %v4567_v27  ;;  %v4568_v23 = vunpack.i.l.bf16 %v4567_v27 }
 0x1ae   : > { %v1970_v53 = vmax.f32 %v1906_v26, 0.0  ;;  %v1971_v14 = vmax.f32 %v1907_v51, 0.0  ;;  %3865 = vmatprep.mubr.msk.bf16.mxu1 %vm2052_vm0, %v2010_v40  ;;  %v4688_v26 = vpop.permute.xlu0 %4687 }
 0x1af   : > { %v1071_v18 = vmul.f32 %v4569_v30, %v5099_v28  ;;  %v1070_v43 = vmul.f32 %v4568_v23, %v5099_v28  ;;  %v4690_v3 = vunpack.i.h.bf16 %v4688_v26  ;;  %v4689_v38 = vunpack.i.l.bf16 %v4688_v26 }
 0x1b0   : > { %v2011_v63 = vpack.c.bf16 %v1971_v14, %v1970_v53  ;;  %v4639_v14 = vunpack.i.h.bf16 %v5563_v55 }
 0x1b1   : > { %v4573_v41 = vpop.permute.xlu1 %4572  ;;  %v1135_v47 = vadd.f32 %v1071_v18, %v747_v4  ;;  %v1134_v50 = vadd.f32 %v1070_v43, %v746_v24  ;;  %v1073_v36 = vmul.f32 %v4690_v3, %v5099_v28  ;;  %v1072_v9 = vmul.f32 %v4689_v38, %v5099_v28 }
 0x1b2   : > { %v4575_v58 = vunpack.i.h.bf16 %v4573_v41  ;;  %v4574_v32 = vunpack.i.l.bf16 %v4573_v41  ;;  %3866 = vmatmul.mubr.msk.bf16.gmra.mxu1 %vm2052_vm0, %v2011_v63  ;;  %v749_v63 = vmul.f32 %v4639_v14, %v5094_v46  ;;  %v748_v41 = vmul.f32 %v4638_v17, %v5094_v46 }
 0x1b3   : > { %v1522_v35 = vadd.f32 %v1458_v12, %v1134_v50  ;;  %v1523_v29 = vadd.f32 %v1459_v8, %v1135_v47  ;;  %v5607_v24 = vpop.f32.mrf.mxu0 }
 0x1b4   : > { %v1457_v11 = vmul.f32 %v4575_v58, %v5166_v42  ;;  %v1456_v1 = vmul.f32 %v4574_v32, %v5166_v42  ;;  %v5996_v58 = vld [vmem:[#allocation11_spill] sm:$0xff]  ;;  %v1136_v18 = vadd.f32 %v1072_v9, %v748_v41  ;;  %v1137_v43 = vadd.f32 %v1073_v36, %v749_v63 }
 0x1b5   : > { %v4160_v32 = vunpack.i.h.bf16 %v5996_v58  ;;  %v4159_v22 = vunpack.i.l.bf16 %v5996_v58  ;;  %v4654_v63 = vunpack.i.l.bf16 %v5568_v2  ;;  %v4684_v36 = vunpack.i.h.bf16 %v5585_v52 }
 0x1b6   : > { %v4584_v34 = vpop.permute.xlu1 %4583  ;;  %v1520_v13 = vadd.f32 %v1456_v1, %v1132_v19  ;;  %v1521_v60 = vadd.f32 %v1457_v11, %v1133_v45  ;;  %v4683_v9 = vunpack.i.l.bf16 %v5585_v52 }
 0x1b7   : > { %v4586_v37 = vunpack.i.h.bf16 %v4584_v34  ;;  %v4585_v56 = vunpack.i.l.bf16 %v4584_v34  ;;  %v751_v4 = vmul.f32 %v4160_v32, %v5094_v46  ;;  %v4608_v34 = vunpack.i.h.bf16 %v5436_v39 }
 0x1b9   : > { %v1845_v20 = vmul.f32 %v4586_v37, %v5174_v48  ;;  %v1844_v6 = vmul.f32 %v4585_v56, %v5174_v48  ;;  %v750_v37 = vmul.f32 %v4159_v22, %v5094_v46  ;;  %v4607_v56 = vunpack.i.l.bf16 %v5436_v39 }
 0x1ba   : > { %v4589_v54 = vpop.permute.xlu1 %4588 }
 0x1bb   : > { %v1908_v5 = vadd.f32 %v1844_v6, %v1520_v13  ;;  %v1909_v0 = vadd.f32 %v1845_v20, %v1521_v60  ;;  %v4591_v21 = vunpack.i.h.bf16 %v4589_v54  ;;  %v4590_v16 = vunpack.i.l.bf16 %v4589_v54  ;;  %v5615_v6 = vpop.f32.mrf.mxu0 }
 0x1bc   : > { %v1463_v54 = vmul.f32 %v4608_v34, %v5166_v42 }
 0x1bd   : > { %v1972_v7 = vmax.f32 %v1908_v5, 0.0  ;;  %v1973_v15 = vmax.f32 %v1909_v0, 0.0  ;;  %v1847_v57 = vmul.f32 %v4591_v21, %v5174_v48  ;;  %v1846_v59 = vmul.f32 %v4590_v16, %v5174_v48 }
 0x1be   : > { %v1462_v16 = vmul.f32 %v4607_v56, %v5166_v42 }
 0x1bf   : > { %v1910_v51 = vadd.f32 %v1846_v59, %v1522_v35  ;;  %v1911_v27 = vadd.f32 %v1847_v57, %v1523_v29  ;;  %v4595_v40 = vpop.permute.xlu1 %4594  ;;  %v2012_v53 = vpack.c.bf16 %v1973_v15, %v1972_v7  ;;  %v5620_v57 = vpop.f32.mrf.mxu0 }
 0x1c0   : > { %v4597_v30 = vunpack.i.h.bf16 %v4595_v40  ;;  %v4596_v55 = vunpack.i.l.bf16 %v4595_v40 }
 0x1c1   : > { %v1974_v25 = vmax.f32 %v1910_v51, 0.0  ;;  %v1975_v49 = vmax.f32 %v1911_v27, 0.0  ;;  %3869 = vmatprep.mubr.msk.bf16.mxu1 %vm2052_vm0, %v2012_v53  ;;  %v5624_v17 = vpop.f32.mrf.mxu0 }
 0x1c2   : > { %v1075_v61 = vmul.f32 %v4597_v30, %v5099_v28  ;;  %v1074_v44 = vmul.f32 %v4596_v55, %v5099_v28 }
 0x1c3   : > { %v2013_v23 = vpack.c.bf16 %v1975_v49, %v1974_v25  ;;  %v5628_v41 = vpop.f32.mrf.mxu0 }
 0x1c4   : > { %v4601_v10 = vpop.permute.xlu1 %4600  ;;  %v1139_v47 = vadd.f32 %v1075_v61, %v751_v4  ;;  %v1138_v8 = vadd.f32 %v1074_v44, %v750_v37 }
 0x1c5   : > { %v4603_v62 = vunpack.i.h.bf16 %v4601_v10  ;;  %v4602_v31 = vunpack.i.l.bf16 %v4601_v10  ;;  %3870 = vmatmul.mubr.msk.bf16.gmra.mxu1 %vm2052_vm0, %v2013_v23  ;;  %v4655_v23 = vunpack.i.h.bf16 %v5568_v2  ;;  %v4693_v10 = vpop.permute.xlu0 %4692  ;;  %v5637_v22 = vpop.f32.mrf.mxu0  ;;  %v1853_v2 = vmul.f32 %v4684_v36, %v5174_v48 }
 0x1c6   : > { %v1527_v15 = vadd.f32 %v1463_v54, %v1139_v47  ;;  %v1526_v59 = vadd.f32 %v1462_v16, %v1138_v8  ;;  %v4695_v61 = vunpack.i.h.bf16 %v4693_v10  ;;  %v4694_v4 = vunpack.i.l.bf16 %v4693_v10 }
 0x1c7   : > { %v1461_v11 = vmul.f32 %v4603_v62, %v5166_v42  ;;  %v1460_v1 = vmul.f32 %v4602_v31, %v5166_v42  ;;  %v753_v55 = vmul.f32 %v4655_v23, %v5094_v46  ;;  %v752_v62 = vmul.f32 %v4654_v63, %v5094_v46  ;;  %v5643_v37 = vpop.f32.mrf.mxu0 }
 0x1c8   : > { %v1079_v56 = vmul.f32 %v4695_v61, %v5099_v28  ;;  %v1078_v8 = vmul.f32 %v4694_v4, %v5099_v28 }
 0x1c9   : > { %v4643_v33 = vpop.permute.xlu1 %4642  ;;  %v1524_v50 = vadd.f32 %v1460_v1, %v1136_v18  ;;  %v1525_v13 = vadd.f32 %v1461_v11, %v1137_v43  ;;  %v1852_v11 = vmul.f32 %v4683_v9, %v5174_v48  ;;  %v5651_v16 = vpop.f32.mrf.mxu0 }
 0x1ca   : > { %v4645_v19 = vunpack.i.h.bf16 %v4643_v33  ;;  %v4644_v45 = vunpack.i.l.bf16 %v4643_v33 }
 0x1cc   : > { %v1849_v60 = vmul.f32 %v4645_v19, %v5174_v48  ;;  %v1848_v20 = vmul.f32 %v4644_v45, %v5174_v48 }
 0x1cd   : > { %v4648_v12 = vpop.permute.xlu1 %4647 }
 0x1ce   : > { %v1912_v5 = vadd.f32 %v1848_v20, %v1524_v50  ;;  %v1913_v0 = vadd.f32 %v1849_v60, %v1525_v13  ;;  %v4650_v21 = vunpack.i.h.bf16 %v4648_v12  ;;  %v4649_v35 = vunpack.i.l.bf16 %v4648_v12 }
 0x1d0   : > { %v1976_v39 = vmax.f32 %v1912_v5, 0.0  ;;  %v1977_v29 = vmax.f32 %v1913_v0, 0.0  ;;  %v1851_v7 = vmul.f32 %v4650_v21, %v5174_v48  ;;  %v1850_v26 = vmul.f32 %v4649_v35, %v5174_v48 }
 0x1d2   : > { %v1915_v51 = vadd.f32 %v1851_v7, %v1527_v15  ;;  %v4659_v27 = vpop.permute.xlu1 %4658  ;;  %v2014_v40 = vpack.c.bf16 %v1977_v29, %v1976_v39  ;;  %v1914_v53 = vadd.f32 %v1850_v26, %v1526_v59 }
 0x1d3   : > { %v4661_v38 = vunpack.i.h.bf16 %v4659_v27  ;;  %v4660_v25 = vunpack.i.l.bf16 %v4659_v27 }
 0x1d4   : > { %v1979_v14 = vmax.f32 %v1915_v51, 0.0  ;;  %3873 = vmatprep.mubr.msk.bf16.mxu1 %vm2052_vm0, %v2014_v40  ;;  %v1978_v3 = vmax.f32 %v1914_v53, 0.0  ;;  %v5653_v51 = vpop.f32.mrf.mxu0 }
 0x1d5   : > { %v1077_v58 = vmul.f32 %v4661_v38, %v5099_v28  ;;  %v1076_v32 = vmul.f32 %v4660_v25, %v5099_v28  ;;  %v4710_v38 = vpop.permute.xlu0 %4709 }
 0x1d6   : > { %v2015_v30 = vpack.c.bf16 %v1979_v14, %v1978_v3  ;;  %v5658_v23 = vpop.f32.mrf.mxu0 }
 0x1d7   : > { %v4665_v49 = vpop.permute.xlu1 %4664  ;;  %v1140_v44 = vadd.f32 %v1076_v32, %v752_v62  ;;  %v1141_v33 = vadd.f32 %v1077_v58, %v753_v55 }
 0x1d8   : > { %3874 = vmatmul.mubr.msk.bf16.gmra.mxu1 %vm2052_vm0, %v2015_v30  ;;  %v4667_v52 = vunpack.i.h.bf16 %v4665_v49  ;;  %v4666_v1 = vunpack.i.l.bf16 %v4665_v49  ;;  %v5660_v32 = vpop.f32.mrf.mxu0 }
 0x1d9   : > { %v4727_v9 = vpop.permute.xlu0 %4726 }
 0x1da   : > { %v755_v60 = vmul.f32 %v4667_v52, %v5094_v46  ;;  %v754_v20 = vmul.f32 %v4666_v1, %v5094_v46  ;;  %v5663_v62 = vpop.f32.mrf.mxu0 }
 0x1dc   : > { %v4671_v31 = vpop.permute.xlu1 %4670  ;;  %v1143_v7 = vadd.f32 %v1079_v56, %v755_v60  ;;  %v1142_v15 = vadd.f32 %v1078_v8, %v754_v20  ;;  %v5665_v1 = vpop.f32.mrf.mxu0  ;;  %v4729_v60 = vunpack.i.h.bf16 %v4727_v9  ;;  %v4728_v20 = vunpack.i.l.bf16 %v4727_v9 }
 0x1dd   : > { %v4673_v18 = vunpack.i.h.bf16 %v4671_v31  ;;  %v4672_v43 = vunpack.i.l.bf16 %v4671_v31  ;;  %v4745_v55 = vpop.permute.xlu0 %4744  ;;  %v4712_v31 = vunpack.i.h.bf16 %v4710_v38 }
 0x1df   : > { %v1465_v34 = vmul.f32 %v4673_v18, %v5166_v42  ;;  %v1464_v19 = vmul.f32 %v4672_v43, %v5166_v42 }
 0x1e0   : > { %v4676_v45 = vpop.permute.xlu1 %4675 }
 0x1e1   : > { %v1528_v47 = vadd.f32 %v1464_v19, %v1140_v44  ;;  %v1529_v50 = vadd.f32 %v1465_v34, %v1141_v33  ;;  %v4678_v13 = vunpack.i.h.bf16 %v4676_v45  ;;  %v4677_v12 = vunpack.i.l.bf16 %v4676_v45 }
 0x1e2   : > { %v4747_v33 = vunpack.i.h.bf16 %v4745_v55  ;;  %v4746_v34 = vunpack.i.l.bf16 %v4745_v55  ;;  %v1081_v19 = vmul.f32 %v4712_v31, %v5099_v28 }
 0x1e3   : > { %v1916_v54 = vadd.f32 %v1852_v11, %v1528_v47  ;;  %v1917_v5 = vadd.f32 %v1853_v2, %v1529_v50  ;;  %v1467_v0 = vmul.f32 %v4678_v13, %v5166_v42  ;;  %v1466_v21 = vmul.f32 %v4677_v12, %v5166_v42  ;;  %v5673_v12 = vpop.f32.mrf.mxu0 }
 0x1e4   : > { %v4711_v2 = vunpack.i.l.bf16 %v4710_v38 }
 0x1e5   : > { %v1980_v35 = vmax.f32 %v1916_v54, 0.0  ;;  %v1981_v39 = vmax.f32 %v1917_v5, 0.0  ;;  %v4699_v29 = vpop.permute.xlu1 %4698  ;;  %v1530_v40 = vadd.f32 %v1466_v21, %v1142_v15  ;;  %v1531_v53 = vadd.f32 %v1467_v0, %v1143_v7 }
 0x1e6   : > { %v4701_v59 = vunpack.i.h.bf16 %v4699_v29  ;;  %v4700_v26 = vunpack.i.l.bf16 %v4699_v29  ;;  %v1080_v45 = vmul.f32 %v4711_v2, %v5099_v28 }
 0x1e7   : > { %v2016_v27 = vpack.c.bf16 %v1981_v39, %v1980_v35  ;;  %v1859_v35 = vmul.f32 %v4747_v33, %v5174_v48  ;;  %v1858_v39 = vmul.f32 %v4746_v34, %v5174_v48 }
 0x1e8   : > { %v1855_v14 = vmul.f32 %v4701_v59, %v5174_v48  ;;  %v1854_v3 = vmul.f32 %v4700_v26, %v5174_v48 }
 0x1e9   : > { %3877 = vmatprep.mubr.msk.bf16.mxu1 %vm2052_vm0, %v2016_v27  ;;  %v1469_v27 = vmul.f32 %v4729_v60, %v5166_v42  ;;  %v2445_v60 = vmax.f32 %v5643_v37, 0.0 }
 0x1ea   : > { %v1918_v25 = vadd.f32 %v1854_v3, %v1530_v40  ;;  %v1919_v49 = vadd.f32 %v1855_v14, %v1531_v53  ;;  %v4705_v30 = vpop.permute.xlu1 %4704  ;;  %v1468_v40 = vmul.f32 %v4728_v20, %v5166_v42  ;;  %v5683_v53 = vpop.f32.mrf.mxu0  ;;  %v2447_v20 = vmax.f32 %v5663_v62, 0.0 }
 0x1eb   : > { %v4707_v18 = vunpack.i.h.bf16 %v4705_v30  ;;  %v4706_v43 = vunpack.i.l.bf16 %v4705_v30  ;;  %v2450_v62 = vmax.f32 %v5673_v12, 0.0 }
 0x1ec   : > { %v1982_v63 = vmax.f32 %v1918_v25, 0.0  ;;  %v1983_v36 = vmax.f32 %v1919_v49, 0.0 }
 0x1ed   : > { %v757_v50 = vmul.f32 %v4707_v18, %v5094_v46  ;;  %v756_v13 = vmul.f32 %v4706_v43, %v5094_v46  ;;  %v2439_v18 = vmax.f32 %v5624_v17, 0.0  ;;  %v2440_v17 = vmax.f32 %v5607_v24, 0.0 }
 0x1ee   : > { %v4715_v10 = vpop.permute.xlu1 %4714  ;;  %v2017_v58 = vpack.c.bf16 %v1983_v36, %v1982_v63 }
 0x1ef   : > { %v4717_v4 = vunpack.i.h.bf16 %v4715_v10  ;;  %v4716_v44 = vunpack.i.l.bf16 %v4715_v10  ;;  %v1144_v59 = vadd.f32 %v1080_v45, %v756_v13  ;;  %v1145_v26 = vadd.f32 %v1081_v19, %v757_v50 }
 0x1f0   : > { %3878 = vmatmul.mubr.msk.bf16.gmra.mxu1 %vm2052_vm0, %v2017_v58  ;;  %v2234_v58 = vpop.f32.mrf.mxu0  ;;  %v2443_v45 = vmax.f32 %v5651_v16, 0.0  ;;  %v2446_v16 = vmax.f32 %v5658_v23, 0.0  ;;  %v2453_v23 = vmax.f32 %v5683_v53, 0.0 }
 0x1f1   : > { %v759_v54 = vmul.f32 %v4717_v4, %v5094_v46  ;;  %v758_v5 = vmul.f32 %v4716_v44, %v5094_v46  ;;  %v1532_v63 = vadd.f32 %v1468_v40, %v1144_v59  ;;  %v1533_v36 = vadd.f32 %v1469_v27, %v1145_v26 }
 0x1f2   : > { %v3839_v2 = vpop.f32.mrf.mxu0 }
 0x1f3   : > { %v4721_v61 = vpop.permute.xlu1 %4720  ;;  %v2456_v40 = vmax.f32 %v3839_v2, 0.0 }
 0x1f4   : > { %v4723_v11 = vunpack.i.h.bf16 %v4721_v61  ;;  %v4722_v52 = vunpack.i.l.bf16 %v4721_v61  ;;  %v2247_v44 = vpop.f32.mrf.mxu0 }
 0x1f6   : > { %v1083_v56 = vmul.f32 %v4723_v11, %v5099_v28  ;;  %v1082_v47 = vmul.f32 %v4722_v52, %v5099_v28  ;;  %v2438_v52 = vmax.f32 %v5615_v6, 0.0  ;;  %v3840_v19 = vpop.f32.mrf.mxu0 }
 0x1f7   : > { %v2457_v12 = vmax.f32 %v3840_v19, 0.0 }
 0x1f8   : > { %v4733_v8 = vpop.permute.xlu1 %4732  ;;  %v1146_v28 = vadd.f32 %v1082_v47, %v758_v5  ;;  %v1147_v29 = vadd.f32 %v1083_v56, %v759_v54  ;;  %v2502_v34 = vpack.c.bf16 %v2439_v18, %v2438_v52  ;;  %v2442_v56 = vmax.f32 %v5637_v22, 0.0  ;;  %v2250_v47 = vpop.f32.mrf.mxu0 }
 0x1f9   : > { %v4735_v0 = vunpack.i.h.bf16 %v4733_v8  ;;  %v4734_v21 = vunpack.i.l.bf16 %v4733_v8  ;;  %v2506_v54 = vpack.c.bf16 %v2447_v20, %v2446_v16  ;;  %v2449_v5 = vmax.f32 %v5660_v32, 0.0 }
 0x1fa   : > { %v2504_v50 = vpack.c.bf16 %v2443_v45, %v2442_v56  ;;  %v2454_v32 = vmax.f32 %v2247_v44, 0.0 }
 0x1fb   : > { %v1471_v7 = vmul.f32 %v4735_v0, %v5166_v42  ;;  %v1470_v15 = vmul.f32 %v4734_v21, %v5166_v42  ;;  %v2451_v0 = vmax.f32 %v2234_v58, 0.0  ;;  %v2448_v21 = vmax.f32 %v5653_v51, 0.0 }
 0x1fd   : > { %v1534_v46 = vadd.f32 %v1470_v15, %v1146_v28  ;;  %v1535_v14 = vadd.f32 %v1471_v7, %v1147_v29  ;;  %v4739_v3 = vpop.permute.xlu1 %4738  ;;  %v2455_v29 = vmax.f32 %v2250_v47, 0.0  ;;  %v2452_v7 = vmax.f32 %v5665_v1, 0.0 }
 0x1fe   : > { %v4741_v38 = vunpack.i.h.bf16 %v4739_v3  ;;  %v4740_v25 = vunpack.i.l.bf16 %v4739_v3  ;;  %v2511_v3 = vpack.c.bf16 %v2457_v12, %v2456_v40 }
 0x1ff   : > { %v1923_v49 = vadd.f32 %v1859_v35, %v1535_v14  ;;  %v1922_v30 = vadd.f32 %v1858_v39, %v1534_v46  ;;  %v2507_v35 = vpack.c.bf16 %v2449_v5, %v2448_v21  ;;  %v2508_v39 = vpack.c.bf16 %v2451_v0, %v2450_v62  ;;  %v4759_v0 = vld [vmem:[%s5921_s3] sm:$0xff]  }
 0x200   : > { %v1857_v9 = vmul.f32 %v4741_v38, %v5174_v48  ;;  %v1856_v10 = vmul.f32 %v4740_v25, %v5174_v48  ;;  %v2441_v48 = vmax.f32 %v5620_v57, 0.0  ;;  %v3843_v13 = vpop.f32.mrf.mxu0  ;;  %v2444_v57 = vmax.f32 %v5628_v41, 0.0 }
 0x201   : > { %v1987_v42 = vmax.f32 %v1923_v49, 0.0  ;;  %v1986_v61 = vmax.f32 %v1922_v30, 0.0  ;;  %v2509_v15 = vpack.c.bf16 %v2453_v23, %v2452_v7  ;;  %v2510_v51 = vpack.c.bf16 %v2455_v29, %v2454_v32 }
 0x202   : > { %v1920_v55 = vadd.f32 %v1856_v10, %v1532_v63  ;;  %v1921_v31 = vadd.f32 %v1857_v9, %v1533_v36  ;;  %v2503_v6 = vpack.c.bf16 %v2441_v48, %v2440_v17  ;;  %v2263_v8 = vpop.f32.mrf.mxu0  ;;  %v2505_v24 = vpack.c.bf16 %v2445_v60, %v2444_v57  ;;  %v4757_v60 = vld [vmem:[%s5921_s3 + $0x10] sm:$0xff]  }
 0x203   : > { %v2019_v33 = vpack.c.bf16 %v1987_v42, %v1986_v61  ;;  %v2458_v14 = vmax.f32 %v2263_v8, 0.0  ;;  %v2460_v49 = vmax.f32 %v3843_v13, 0.0 }
 0x204   : > { %v1984_v43 = vmax.f32 %v1920_v55, 0.0  ;;  %v1985_v11 = vmax.f32 %v1921_v31, 0.0  ;;  %v3844_v22 = vpop.f32.mrf.mxu0 }
 0x205   : > { %v2461_v1 = vmax.f32 %v3844_v22, 0.0  ;;  %v4758_v22 = vld [vmem:[%s5921_s3 + $0x8] sm:$0xff]  }
 0x206   : > { %v2018_v4 = vpack.c.bf16 %v1985_v11, %v1984_v43  ;;  %v2266_v37 = vpop.f32.mrf.mxu0 }
 0x207   : > { %v2459_v27 = vmax.f32 %v2266_v37, 0.0  ;;  %v2513_v36 = vpack.c.bf16 %v2461_v1, %v2460_v49 }
 0x208   : > { %3881 = vmatprep.mubr.msk.bf16.mxu1 %vm2052_vm0, %v2018_v4 }
 0x209   : > { %3882 = vmatmul.mubr.msk.bf16.gmra.mxu1 %vm2052_vm0, %v2019_v33  ;;  %v2512_v53 = vpack.c.bf16 %v2459_v27, %v2458_v14 }
 0x20a   : > { %3893 = vmatprep.mubr.msk.bf16.mxu1 %vm2052_vm0, %v2502_v34 }
 0x211   : > { %3894 = vmatmul.mubr.msk.bf16.vlgmr.msra.gmra.mxu1 %vm2052_vm0, %v2503_v6  ;;  %v4756_v6 = vld [vmem:[%s5921_s3 + $0x18] sm:$0xff]  }
 0x212   : > { %3897 = vmatprep.mubr.msk.bf16.mxu1 %vm2052_vm0, %v2504_v50  ;;  %3957 = vmatprep.subr.bf16.mxu0 %v4756_v6 }
 0x213   : > { %v3847_v41 = vpop.f32.mrf.mxu0  ;;  %3958 = vmatpush3.bf16.msra.mxu0 %v4756_v6 }
 0x214   : > { %v2464_v42 = vmax.f32 %v3847_v41, 0.0  ;;  %3959 = vmatprep.subr.bf16.mxu0 %v4757_v60 }
 0x215   : > { %v2279_v28 = vpop.f32.mrf.mxu0 }
 0x216   : > { %v2462_v63 = vmax.f32 %v2279_v28, 0.0 }
 0x217   : > { %v3848_v59 = vpop.f32.mrf.mxu0  ;;  %3960 = vmatpush3.bf16.msra.mxu0 %v4757_v60 }
 0x218   : > { %v2465_v55 = vmax.f32 %v3848_v59, 0.0  ;;  %3961 = vmatprep.subr.bf16.mxu0 %v4758_v22 }
 0x219   : > { %3898 = vmatmul.mubr.msk.bf16.gmra.mxu1 %vm2052_vm0, %v2505_v24  ;;  %v2282_v26 = vpop.f32.mrf.mxu0 }
 0x21a   : > { %3901 = vmatprep.mubr.msk.bf16.mxu1 %vm2052_vm0, %v2506_v54  ;;  %v2463_v25 = vmax.f32 %v2282_v26, 0.0  ;;  %v2515_v43 = vpack.c.bf16 %v2465_v55, %v2464_v42 }
 0x21b   : > { %3962 = vmatpush3.bf16.msra.mxu0 %v4758_v22 }
 0x21c   : > { %v2514_v9 = vpack.c.bf16 %v2463_v25, %v2462_v63  ;;  %3963 = vmatprep.subr.bf16.mxu0 %v4759_v0 }
 0x21f   : > { %3964 = vmatpush3.bf16.msra.mxu0 %v4759_v0 }
 0x221   : > { %3902 = vmatmul.mubr.msk.bf16.gmra.mxu1 %vm2052_vm0, %v2507_v35 }
 0x222   : > { %3905 = vmatprep.mubr.msk.bf16.mxu1 %vm2052_vm0, %v2508_v39 }
 0x226   : > { %v3851_v46 = vpop.f32.mrf.mxu0 }
 0x227   : > { %v2468_v33 = vmax.f32 %v3851_v46, 0.0 }
 0x228   : > { %v2295_v38 = vpop.f32.mrf.mxu0 }
 0x229   : > { %3906 = vmatmul.mubr.msk.bf16.gmra.mxu1 %vm2052_vm0, %v2509_v15  ;;  %v2466_v18 = vmax.f32 %v2295_v38, 0.0 }
 0x22a   : > { %3909 = vmatprep.mubr.msk.bf16.mxu1 %vm2052_vm0, %v2510_v51  ;;  %v3852_v30 = vpop.f32.mrf.mxu0 }
 0x22b   : > { %v2469_v4 = vmax.f32 %v3852_v30, 0.0 }
 0x22c   : > { %v2298_v10 = vpop.f32.mrf.mxu0 }
 0x22d   : > { %v2467_v2 = vmax.f32 %v2298_v10, 0.0  ;;  %v2517_v48 = vpack.c.bf16 %v2469_v4, %v2468_v33 }
 0x22f   : > { %v2516_v11 = vpack.c.bf16 %v2467_v2, %v2466_v18 }
 0x231   : > { %3910 = vmatmul.mubr.msk.bf16.gmra.mxu1 %vm2052_vm0, %v2511_v3 }
 0x232   : > { %3913 = vmatprep.mubr.msk.bf16.mxu1 %vm2052_vm0, %v2512_v53 }
 0x239   : > { %v3855_v58 = vpop.f32.mrf.mxu1  ;;  %3914 = vmatmul.mubr.msk.bf16.gmra.mxu1 %vm2052_vm0, %v2513_v36 }
 0x23a   : > { %3917 = vmatprep.mubr.msk.bf16.mxu1 %vm2052_vm0, %v2514_v9  ;;  %v2472_v56 = vmax.f32 %v3855_v58, 0.0 }
 0x23b   : > { %v2311_v31 = vpop.f32.mrf.mxu1 }
 0x23c   : > { %v2470_v34 = vmax.f32 %v2311_v31, 0.0 }
 0x23d   : > { %v3856_v61 = vpop.f32.mrf.mxu1 }
 0x23e   : > { %v2473_v45 = vmax.f32 %v3856_v61, 0.0 }
 0x23f   : > { %v2314_v52 = vpop.f32.mrf.mxu1 }
 0x240   : > { %v2471_v44 = vmax.f32 %v2314_v52, 0.0  ;;  %v2519_v50 = vpack.c.bf16 %v2473_v45, %v2472_v56 }
 0x241   : > { %3918 = vmatmul.mubr.msk.bf16.gmra.mxu1 %vm2052_vm0, %v2515_v43 }
 0x242   : > { %3921 = vmatprep.mubr.msk.bf16.mxu1 %vm2052_vm0, %v2516_v11  ;;  %v2518_v19 = vpack.c.bf16 %v2471_v44, %v2470_v34 }
 0x249   : > { %3922 = vmatmul.mubr.msk.bf16.gmra.mxu1 %vm2052_vm0, %v2517_v48 }
 0x24a   : > { %3925 = vmatprep.mubr.msk.bf16.mxu1 %vm2052_vm0, %v2518_v19 }
 0x24c   : > { %v3859_v17 = vpop.f32.mrf.mxu1 }
 0x24d   : > { %v2476_v24 = vmax.f32 %v3859_v17, 0.0 }
 0x24e   : > { %v2327_v47 = vpop.f32.mrf.mxu1 }
 0x24f   : > { %v2474_v57 = vmax.f32 %v2327_v47, 0.0 }
 0x250   : > { %v3860_v13 = vpop.f32.mrf.mxu1 }
 0x251   : > { %3926 = vmatmul.mubr.msk.bf16.gmra.mxu1 %vm2052_vm0, %v2519_v50  ;;  %v2477_v8 = vmax.f32 %v3860_v13, 0.0 }
 0x252   : > { %v2330_v20 = vpop.f32.mrf.mxu1 }
 0x253   : > { %v2475_v16 = vmax.f32 %v2330_v20, 0.0  ;;  %v2521_v5 = vpack.c.bf16 %v2477_v8, %v2476_v24 }
 0x255   : > { %v2520_v54 = vpack.c.bf16 %v2475_v16, %v2474_v57 }
 0x257   : > { %3929 = vmatprep.mubr.msk.bf16.mxu1 %vm2052_vm0, %v2520_v54 }
 0x259   : > { %3930 = vmatmul.mubr.msk.bf16.gmra.mxu1 %vm2052_vm0, %v2521_v5 }
 0x25f   : > { %v3863_v21 = vpop.f32.mrf.mxu1 }
 0x260   : > { %v2480_v28 = vmax.f32 %v3863_v21, 0.0 }
 0x261   : > { %v2343_v37 = vpop.f32.mrf.mxu1 }
 0x262   : > { %v2478_v39 = vmax.f32 %v2343_v37, 0.0 }
 0x263   : > { %v3864_v62 = vpop.f32.mrf.mxu1 }
 0x264   : > { %v2481_v35 = vmax.f32 %v3864_v62, 0.0 }
 0x265   : > { %v2346_v41 = vpop.f32.mrf.mxu1 }
 0x266   : > { %v2479_v23 = vmax.f32 %v2346_v41, 0.0  ;;  %v2523_v7 = vpack.c.bf16 %v2481_v35, %v2480_v28 }
 0x268   : > { %v2522_v29 = vpack.c.bf16 %v2479_v23, %v2478_v39 }
 0x26a   : > { %3933 = vmatprep.mubr.msk.bf16.mxu1 %vm2052_vm0, %v2522_v29 }
 0x26b   : > { %3934 = vmatmul.mubr.msk.bf16.gmra.mxu1 %vm2052_vm0, %v2523_v7 }
 0x272   : > { %v3867_v32 = vpop.f32.mrf.mxu1 }
 0x273   : > { %v2484_v40 = vmax.f32 %v3867_v32, 0.0 }
 0x274   : > { %v2359_v15 = vpop.f32.mrf.mxu1 }
 0x275   : > { %v2482_v26 = vmax.f32 %v2359_v15, 0.0 }
 0x276   : > { %v3868_v59 = vpop.f32.mrf.mxu1 }
 0x277   : > { %v2485_v51 = vmax.f32 %v3868_v59, 0.0 }
 0x278   : > { %v2362_v12 = vpop.f32.mrf.mxu1 }
 0x279   : > { %v2483_v27 = vmax.f32 %v2362_v12, 0.0  ;;  %v2525_v14 = vpack.c.bf16 %v2485_v51, %v2484_v40 }
 0x27b   : > { %v2524_v46 = vpack.c.bf16 %v2483_v27, %v2482_v26 }
 0x27d   : > { %3937 = vmatprep.mubr.msk.bf16.mxu1 %vm2052_vm0, %v2524_v46 }
 0x27e   : > { %3938 = vmatmul.mubr.msk.bf16.gmra.mxu1 %vm2052_vm0, %v2525_v14 }
 0x285   : > { %v3871_v3 = vpop.f32.mrf.mxu1 }
 0x286   : > { %v2488_v63 = vmax.f32 %v3871_v3, 0.0 }
 0x287   : > { %v2375_v53 = vpop.f32.mrf.mxu1 }
 0x288   : > { %v2486_v49 = vmax.f32 %v2375_v53, 0.0 }
 0x289   : > { %v3872_v38 = vpop.f32.mrf.mxu1 }
 0x28a   : > { %v2489_v1 = vmax.f32 %v3872_v38, 0.0 }
 0x28b   : > { %v2378_v25 = vpop.f32.mrf.mxu1 }
 0x28c   : > { %v2487_v30 = vmax.f32 %v2378_v25, 0.0  ;;  %v2527_v9 = vpack.c.bf16 %v2489_v1, %v2488_v63 }
 0x28e   : > { %v2526_v36 = vpack.c.bf16 %v2487_v30, %v2486_v49 }
 0x290   : > { %3941 = vmatprep.mubr.msk.bf16.mxu1 %vm2052_vm0, %v2526_v36 }
 0x291   : > { %3942 = vmatmul.mubr.msk.bf16.gmra.mxu1 %vm2052_vm0, %v2527_v9 }
 0x298   : > { %v3875_v10 = vpop.f32.mrf.mxu1 }
 0x299   : > { %v2492_v18 = vmax.f32 %v3875_v10, 0.0 }
 0x29a   : > { %v2391_v58 = vpop.f32.mrf.mxu1 }
 0x29b   : > { %v2490_v42 = vmax.f32 %v2391_v58, 0.0 }
 0x29c   : > { %v3876_v55 = vpop.f32.mrf.mxu1 }
 0x29d   : > { %v2493_v31 = vmax.f32 %v3876_v55, 0.0 }
 0x29e   : > { %v2394_v2 = vpop.f32.mrf.mxu1 }
 0x29f   : > { %v2491_v61 = vmax.f32 %v2394_v2, 0.0  ;;  %v2529_v11 = vpack.c.bf16 %v2493_v31, %v2492_v18 }
 0x2a1   : > { %v2528_v43 = vpack.c.bf16 %v2491_v61, %v2490_v42 }
 0x2a3   : > { %3945 = vmatprep.mubr.msk.bf16.mxu1 %vm2052_vm0, %v2528_v43 }
 0x2a4   : > { %3946 = vmatmul.mubr.msk.bf16.gmra.mxu1 %vm2052_vm0, %v2529_v11 }
 0x2b0   : > { %v3879_v52 = vpop.f32.mrf.mxu1 }
 0x2b1   : > { %v2496_v45 = vmax.f32 %v3879_v52, 0.0 }
 0x2b2   : > { %v2407_v4 = vpop.f32.mrf.mxu1 }
 0x2b3   : > { %v2494_v48 = vmax.f32 %v2407_v4, 0.0 }
 0x2b4   : > { %v3880_v44 = vpop.f32.mrf.mxu1 }
 0x2b5   : > { %v2497_v33 = vmax.f32 %v3880_v44, 0.0 }
 0x2b6   : > { %v2410_v34 = vpop.f32.mrf.mxu1 }
 0x2b7   : > { %v2495_v19 = vmax.f32 %v2410_v34, 0.0  ;;  %v2531_v56 = vpack.c.bf16 %v2497_v33, %v2496_v45 }
 0x2b9   : > { %v2530_v17 = vpack.c.bf16 %v2495_v19, %v2494_v48 }
 0x2bb   : > { %3949 = vmatprep.mubr.msk.bf16.mxu1 %vm2052_vm0, %v2530_v17 }
 0x2bc   : > { %3950 = vmatmul.mubr.msk.bf16.gmra.mxu1 %vm2052_vm0, %v2531_v56 }
 0x2c9   : > { %v3883_v6 = vpop.f32.mrf.mxu1 }
 0x2ca   : > { %v2500_v8 = vmax.f32 %v3883_v6, 0.0 }
 0x2cb   : > { %v2423_v47 = vpop.f32.mrf.mxu1 }
 0x2cc   : > { %v2498_v20 = vmax.f32 %v2423_v47, 0.0 }
 0x2cd   : > { %v3884_v50 = vpop.f32.mrf.mxu1 }
 0x2ce   : > { %v2501_v13 = vmax.f32 %v3884_v50, 0.0 }
 0x2cf   : > { %v2426_v60 = vpop.f32.mrf.mxu1 }
 0x2d0   : > { %v2499_v57 = vmax.f32 %v2426_v60, 0.0  ;;  %v2533_v54 = vpack.c.bf16 %v2501_v13, %v2500_v8 }
 0x2d1   : > { %v3895_v16 = vpop.f32.mrf.mxu1 }
 0x2d2   : > { %v2532_v24 = vpack.c.bf16 %v2499_v57, %v2498_v20  ;;  %v2954_v35 = vmax.f32 %v3895_v16, 0.0 }
 0x2d3   : > { %v2697_v22 = vpop.f32.mrf.mxu1 }
 0x2d4   : > { %3953 = vmatprep.mubr.msk.bf16.mxu1 %vm2052_vm0, %v2532_v24  ;;  %v2952_v37 = vmax.f32 %v2697_v22, 0.0 }
 0x2d5   : > { %v3896_v5 = vpop.f32.mrf.mxu1  ;;  %3954 = vmatmul.mubr.msk.bf16.gmra.mxu1 %vm2052_vm0, %v2533_v54 }
 0x2d6   : > { %v2955_v0 = vmax.f32 %v3896_v5, 0.0 }
 0x2d7   : > { %v2700_v21 = vpop.f32.mrf.mxu1 }
 0x2d8   : > { %v2953_v62 = vmax.f32 %v2700_v21, 0.0  ;;  %v3017_v23 = vpack.c.bf16 %v2955_v0, %v2954_v35 }
 0x2d9   : > { %v3899_v41 = vpop.f32.mrf.mxu1 }
 0x2da   : > { %v3016_v39 = vpack.c.bf16 %v2953_v62, %v2952_v37  ;;  %v2958_v51 = vmax.f32 %v3899_v41, 0.0 }
 0x2db   : > { %v2713_v28 = vpop.f32.mrf.mxu1 }
 0x2dc   : > { %3965 = vmatprep.mubr.msk.bf16.mxu0 %vm2052_vm0, %v3016_v39  ;;  %v2956_v15 = vmax.f32 %v2713_v28, 0.0 }
 0x2dd   : > { %v3900_v29 = vpop.f32.mrf.mxu1  ;;  %3966 = vmatmul.mubr.msk.bf16.vlgmr.msra.gmra.mxu0 %vm2052_vm0, %v3017_v23 }
 0x2de   : > { %v2959_v7 = vmax.f32 %v3900_v29, 0.0 }
 0x2df   : > { %v2716_v32 = vpop.f32.mrf.mxu1 }
 0x2e0   : > { %v2957_v59 = vmax.f32 %v2716_v32, 0.0  ;;  %v3019_v27 = vpack.c.bf16 %v2959_v7, %v2958_v51 }
 0x2e1   : > { %v3903_v12 = vpop.f32.mrf.mxu1 }
 0x2e2   : > { %v3018_v26 = vpack.c.bf16 %v2957_v59, %v2956_v15  ;;  %v2962_v1 = vmax.f32 %v3903_v12, 0.0 }
 0x2e3   : > { %v2729_v40 = vpop.f32.mrf.mxu1 }
 0x2e4   : > { %3969 = vmatprep.mubr.msk.bf16.mxu0 %vm2052_vm0, %v3018_v26  ;;  %v2960_v53 = vmax.f32 %v2729_v40, 0.0 }
 0x2e5   : > { %v3904_v46 = vpop.f32.mrf.mxu1  ;;  %3970 = vmatmul.mubr.msk.bf16.gmra.mxu0 %vm2052_vm0, %v3019_v27 }
 0x2e6   : > { %v2963_v14 = vmax.f32 %v3904_v46, 0.0 }
 0x2e7   : > { %v2732_v3 = vpop.f32.mrf.mxu1 }
 0x2e8   : > { %v2961_v38 = vmax.f32 %v2732_v3, 0.0  ;;  %v3021_v30 = vpack.c.bf16 %v2963_v14, %v2962_v1 }
 0x2e9   : > { %v3907_v25 = vpop.f32.mrf.mxu1 }
 0x2ea   : > { %v3020_v49 = vpack.c.bf16 %v2961_v38, %v2960_v53  ;;  %v2966_v31 = vmax.f32 %v3907_v25, 0.0 }
 0x2eb   : > { %v2745_v63 = vpop.f32.mrf.mxu1 }
 0x2ec   : > { %3973 = vmatprep.mubr.msk.bf16.mxu0 %vm2052_vm0, %v3020_v49  ;;  %v2964_v58 = vmax.f32 %v2745_v63, 0.0 }
 0x2ed   : > { %v3908_v36 = vpop.f32.mrf.mxu1  ;;  %3974 = vmatmul.mubr.msk.bf16.gmra.mxu0 %vm2052_vm0, %v3021_v30 }
 0x2ee   : > { %v2967_v9 = vmax.f32 %v3908_v36, 0.0 }
 0x2ef   : > { %v2748_v10 = vpop.f32.mrf.mxu1 }
 0x2f0   : > { %v2965_v55 = vmax.f32 %v2748_v10, 0.0  ;;  %v3023_v61 = vpack.c.bf16 %v2967_v9, %v2966_v31 }
 0x2f1   : > { %v3911_v2 = vpop.f32.mrf.mxu1 }
 0x2f2   : > { %v3022_v42 = vpack.c.bf16 %v2965_v55, %v2964_v58  ;;  %v2970_v33 = vmax.f32 %v3911_v2, 0.0 }
 0x2f3   : > { %v2761_v18 = vpop.f32.mrf.mxu1 }
 0x2f4   : > { %3977 = vmatprep.mubr.msk.bf16.mxu0 %vm2052_vm0, %v3022_v42  ;;  %v2968_v4 = vmax.f32 %v2761_v18, 0.0 }
 0x2f5   : > { %v3912_v43 = vpop.f32.mrf.mxu1  ;;  %3978 = vmatmul.mubr.msk.bf16.gmra.mxu0 %vm2052_vm0, %v3023_v61 }
 0x2f6   : > { %v2971_v11 = vmax.f32 %v3912_v43, 0.0 }
 0x2f7   : > { %v2764_v52 = vpop.f32.mrf.mxu1 }
 0x2f8   : > { %v2969_v44 = vmax.f32 %v2764_v52, 0.0  ;;  %v3025_v19 = vpack.c.bf16 %v2971_v11, %v2970_v33 }
 0x2f9   : > { %v3915_v34 = vpop.f32.mrf.mxu1 }
 0x2fa   : > { %v3024_v48 = vpack.c.bf16 %v2969_v44, %v2968_v4  ;;  %v2974_v13 = vmax.f32 %v3915_v34, 0.0 }
 0x2fb   : > { %v2777_v45 = vpop.f32.mrf.mxu1 }
 0x2fc   : > { %3981 = vmatprep.mubr.msk.bf16.mxu0 %vm2052_vm0, %v3024_v48  ;;  %v2972_v47 = vmax.f32 %v2777_v45, 0.0 }
 0x2fd   : > { %v3916_v17 = vpop.f32.mrf.mxu1  ;;  %3982 = vmatmul.mubr.msk.bf16.gmra.mxu0 %vm2052_vm0, %v3025_v19 }
 0x2fe   : > { %v2975_v56 = vmax.f32 %v3916_v17, 0.0 }
 0x2ff   : > { %v2780_v6 = vpop.f32.mrf.mxu1 }
 0x300   : > { %v2973_v50 = vmax.f32 %v2780_v6, 0.0  ;;  %v3027_v57 = vpack.c.bf16 %v2975_v56, %v2974_v13 }
 0x301   : > { %v3919_v60 = vpop.f32.mrf.mxu1 }
 0x302   : > { %v3026_v20 = vpack.c.bf16 %v2973_v50, %v2972_v47  ;;  %v2978_v0 = vmax.f32 %v3919_v60, 0.0 }
 0x303   : > { %v2793_v8 = vpop.f32.mrf.mxu1 }
 0x304   : > { %3985 = vmatprep.mubr.msk.bf16.mxu0 %vm2052_vm0, %v3026_v20  ;;  %v2976_v22 = vmax.f32 %v2793_v8, 0.0 }
 0x305   : > { %v3920_v16 = vpop.f32.mrf.mxu1  ;;  %3986 = vmatmul.mubr.msk.bf16.gmra.mxu0 %vm2052_vm0, %v3027_v57 }
 0x306   : > { %v2979_v24 = vmax.f32 %v3920_v16, 0.0 }
 0x307   : > { %v2796_v54 = vpop.f32.mrf.mxu1 }
 0x308   : > { %v2977_v5 = vmax.f32 %v2796_v54, 0.0  ;;  %v3029_v62 = vpack.c.bf16 %v2979_v24, %v2978_v0 }
 0x309   : > { %v3923_v21 = vpop.f32.mrf.mxu1 }
 0x30a   : > { %v3028_v37 = vpack.c.bf16 %v2977_v5, %v2976_v22  ;;  %v2982_v7 = vmax.f32 %v3923_v21, 0.0 }
 0x30b   : > { %v2809_v35 = vpop.f32.mrf.mxu1 }
 0x30c   : > { %3989 = vmatprep.mubr.msk.bf16.mxu0 %vm2052_vm0, %v3028_v37  ;;  %v2980_v28 = vmax.f32 %v2809_v35, 0.0 }
 0x30d   : > { %v3924_v41 = vpop.f32.mrf.mxu1  ;;  %3990 = vmatmul.mubr.msk.bf16.gmra.mxu0 %vm2052_vm0, %v3029_v62 }
 0x30e   : > { %v2983_v39 = vmax.f32 %v3924_v41, 0.0 }
 0x30f   : > { %v2812_v23 = vpop.f32.mrf.mxu1 }
 0x310   : > { %v2981_v29 = vmax.f32 %v2812_v23, 0.0  ;;  %v3031_v59 = vpack.c.bf16 %v2983_v39, %v2982_v7 }
 0x311   : > { %v3927_v32 = vpop.f32.mrf.mxu1 }
 0x312   : > { %v3030_v15 = vpack.c.bf16 %v2981_v29, %v2980_v28  ;;  %v2986_v14 = vmax.f32 %v3927_v32, 0.0 }
 0x313   : > { %v2825_v51 = vpop.f32.mrf.mxu1 }
 0x314   : > { %3993 = vmatprep.mubr.msk.bf16.mxu0 %vm2052_vm0, %v3030_v15  ;;  %v2984_v40 = vmax.f32 %v2825_v51, 0.0 }
 0x315   : > { %v3928_v12 = vpop.f32.mrf.mxu1  ;;  %3994 = vmatmul.mubr.msk.bf16.gmra.mxu0 %vm2052_vm0, %v3031_v59 }
 0x316   : > { %v2987_v26 = vmax.f32 %v3928_v12, 0.0 }
 0x317   : > { %v2828_v27 = vpop.f32.mrf.mxu1 }
 0x318   : > { %v2985_v46 = vmax.f32 %v2828_v27, 0.0  ;;  %v3033_v38 = vpack.c.bf16 %v2987_v26, %v2986_v14 }
 0x319   : > { %v3931_v3 = vpop.f32.mrf.mxu1 }
 0x31a   : > { %v3032_v53 = vpack.c.bf16 %v2985_v46, %v2984_v40  ;;  %v2990_v9 = vmax.f32 %v3931_v3, 0.0 }
 0x31b   : > { %v2841_v1 = vpop.f32.mrf.mxu1 }
 0x31c   : > { %3997 = vmatprep.mubr.msk.bf16.mxu0 %vm2052_vm0, %v3032_v53  ;;  %v2988_v63 = vmax.f32 %v2841_v1, 0.0 }
 0x31d   : > { %v3932_v25 = vpop.f32.mrf.mxu1  ;;  %3998 = vmatmul.mubr.msk.bf16.gmra.mxu0 %vm2052_vm0, %v3033_v38 }
 0x31e   : > { %v2991_v49 = vmax.f32 %v3932_v25, 0.0 }
 0x31f   : > { %v2844_v30 = vpop.f32.mrf.mxu1 }
 0x320   : > { %v2989_v36 = vmax.f32 %v2844_v30, 0.0  ;;  %v3035_v58 = vpack.c.bf16 %v2991_v49, %v2990_v9 }
 0x322   : > { %v3034_v10 = vpack.c.bf16 %v2989_v36, %v2988_v63 }
 0x324   : > { %4001 = vmatprep.mubr.msk.bf16.mxu0 %vm2052_vm0, %v3034_v10 }
 0x325   : > { %4002 = vmatmul.mubr.msk.bf16.gmra.mxu0 %vm2052_vm0, %v3035_v58 }
 0x32b   : > { %v3935_v55 = vpop.f32.mrf.mxu1 }
 0x32c   : > { %v2994_v11 = vmax.f32 %v3935_v55, 0.0 }
 0x32d   : > { %v2857_v31 = vpop.f32.mrf.mxu1 }
 0x32e   : > { %v2992_v18 = vmax.f32 %v2857_v31, 0.0 }
 0x32f   : > { %v3936_v2 = vpop.f32.mrf.mxu1 }
 0x330   : > { %v2995_v42 = vmax.f32 %v3936_v2, 0.0 }
 0x331   : > { %v2860_v61 = vpop.f32.mrf.mxu1 }
 0x332   : > { %v2993_v43 = vmax.f32 %v2860_v61, 0.0  ;;  %v3037_v4 = vpack.c.bf16 %v2995_v42, %v2994_v11 }
 0x334   : > { %v3036_v52 = vpack.c.bf16 %v2993_v43, %v2992_v18 }
 0x336   : > { %4005 = vmatprep.mubr.msk.bf16.mxu0 %vm2052_vm0, %v3036_v52 }
 0x337   : > { %4006 = vmatmul.mubr.msk.bf16.gmra.mxu0 %vm2052_vm0, %v3037_v4 }
 0x33e   : > { %v3939_v44 = vpop.f32.mrf.mxu1 }
 0x33f   : > { %v2998_v56 = vmax.f32 %v3939_v44, 0.0 }
 0x340   : > { %v2873_v33 = vpop.f32.mrf.mxu1 }
 0x341   : > { %v2996_v45 = vmax.f32 %v2873_v33, 0.0 }
 0x342   : > { %v3940_v34 = vpop.f32.mrf.mxu1 }
 0x343   : > { %v2999_v48 = vmax.f32 %v3940_v34, 0.0 }
 0x344   : > { %v2876_v19 = vpop.f32.mrf.mxu1 }
 0x345   : > { %v2997_v17 = vmax.f32 %v2876_v19, 0.0  ;;  %v3039_v47 = vpack.c.bf16 %v2999_v48, %v2998_v56 }
 0x347   : > { %v3038_v6 = vpack.c.bf16 %v2997_v17, %v2996_v45 }
 0x349   : > { %4009 = vmatprep.mubr.msk.bf16.mxu0 %vm2052_vm0, %v3038_v6 }
 0x34a   : > { %4010 = vmatmul.mubr.msk.bf16.gmra.mxu0 %vm2052_vm0, %v3039_v47 }
 0x351   : > { %v3943_v50 = vpop.f32.mrf.mxu1 }
 0x352   : > { %v3002_v24 = vmax.f32 %v3943_v50, 0.0 }
 0x353   : > { %v2889_v13 = vpop.f32.mrf.mxu1 }
 0x354   : > { %v3000_v8 = vmax.f32 %v2889_v13, 0.0 }
 0x355   : > { %v3944_v60 = vpop.f32.mrf.mxu1 }
 0x356   : > { %v3003_v20 = vmax.f32 %v3944_v60, 0.0 }
 0x357   : > { %v2892_v57 = vpop.f32.mrf.mxu1 }
 0x358   : > { %v3001_v16 = vmax.f32 %v2892_v57, 0.0  ;;  %v3041_v22 = vpack.c.bf16 %v3003_v20, %v3002_v24 }
 0x35a   : > { %v3040_v54 = vpack.c.bf16 %v3001_v16, %v3000_v8 }
 0x35c   : > { %4013 = vmatprep.mubr.msk.bf16.mxu0 %vm2052_vm0, %v3040_v54 }
 0x35d   : > { %4014 = vmatmul.mubr.msk.bf16.gmra.mxu0 %vm2052_vm0, %v3041_v22 }
 0x364   : > { %v3947_v5 = vpop.f32.mrf.mxu1 }
 0x365   : > { %v3006_v39 = vmax.f32 %v3947_v5, 0.0 }
 0x366   : > { %v2905_v0 = vpop.f32.mrf.mxu1 }
 0x367   : > { %v3004_v35 = vmax.f32 %v2905_v0, 0.0 }
 0x368   : > { %v3948_v21 = vpop.f32.mrf.mxu1 }
 0x369   : > { %v3007_v37 = vmax.f32 %v3948_v21, 0.0 }
 0x36a   : > { %v2908_v62 = vpop.f32.mrf.mxu1 }
 0x36b   : > { %v3005_v41 = vmax.f32 %v2908_v62, 0.0  ;;  %v3043_v28 = vpack.c.bf16 %v3007_v37, %v3006_v39 }
 0x36d   : > { %v3042_v23 = vpack.c.bf16 %v3005_v41, %v3004_v35 }
 0x36f   : > { %4017 = vmatprep.mubr.msk.bf16.mxu0 %vm2052_vm0, %v3042_v23 }
 0x370   : > { %4018 = vmatmul.mubr.msk.bf16.gmra.mxu0 %vm2052_vm0, %v3043_v28 }
 0x37c   : > { %v3951_v29 = vpop.f32.mrf.mxu1 }
 0x37d   : > { %v3010_v26 = vmax.f32 %v3951_v29, 0.0 }
 0x37e   : > { %v2921_v7 = vpop.f32.mrf.mxu1 }
 0x37f   : > { %v3008_v51 = vmax.f32 %v2921_v7, 0.0 }
 0x380   : > { %v3952_v32 = vpop.f32.mrf.mxu1 }
 0x381   : > { %v3011_v15 = vmax.f32 %v3952_v32, 0.0 }
 0x382   : > { %v2924_v59 = vpop.f32.mrf.mxu1 }
 0x383   : > { %v3009_v12 = vmax.f32 %v2924_v59, 0.0  ;;  %v3045_v40 = vpack.c.bf16 %v3011_v15, %v3010_v26 }
 0x385   : > { %v3044_v27 = vpack.c.bf16 %v3009_v12, %v3008_v51 }
 0x387   : > { %4021 = vmatprep.mubr.msk.bf16.mxu0 %vm2052_vm0, %v3044_v27 }
 0x388   : > { %4022 = vmatmul.mubr.msk.bf16.gmra.mxu0 %vm2052_vm0, %v3045_v40 }
 0x395   : > { %v3955_v46 = vpop.f32.mrf.mxu1 }
 0x396   : > { %v3014_v49 = vmax.f32 %v3955_v46, 0.0 }
 0x397   : > { %v2937_v14 = vpop.f32.mrf.mxu1 }
 0x398   : > { %v3012_v1 = vmax.f32 %v2937_v14, 0.0 }
 0x399   : > { %v3956_v3 = vpop.f32.mrf.mxu1 }
 0x39a   : > { %v3015_v53 = vmax.f32 %v3956_v3, 0.0 }
 0x39b   : > { %v2940_v38 = vpop.f32.mrf.mxu1 }
 0x39c   : > { %v3013_v25 = vmax.f32 %v2940_v38, 0.0  ;;  %v3047_v36 = vpack.c.bf16 %v3015_v53, %v3014_v49 }
 0x39d   : > { %v3967_v30 = vpop.f32.mrf.mxu0 }
 0x39e   : > { %v3046_v63 = vpack.c.bf16 %v3013_v25, %v3012_v1  ;;  %3460 = vst.msk [vmem:[%s5783_s27 + $0x10] sm:$0xff] %vm3457_vm1, %v3967_v30 }
 0x39f   : > { %v3202_v9 = vpop.f32.mrf.mxu0 }
 0x3a0   : > { %3458 = vst.msk [vmem:[%s5783_s27] sm:$0xff] %vm3457_vm1, %v3202_v9  ;;  %4025 = vmatprep.mubr.msk.bf16.mxu0 %vm2052_vm0, %v3046_v63 }
 0x3a1   : > { %v3968_v10 = vpop.f32.mrf.mxu0  ;;  %4026 = vmatmul.mubr.msk.bf16.gmra.mxu0 %vm2052_vm0, %v3047_v36 }
 0x3a2   : > { %3461 = vst.msk [vmem:[%s5783_s27 + $0x18] sm:$0xff] %vm3457_vm1, %v3968_v10 }
 0x3a3   : > { %v3205_v58 = vpop.f32.mrf.mxu0 }
 0x3a4   : > { %3459 = vst.msk [vmem:[%s5783_s27 + $0x8] sm:$0xff] %vm3457_vm1, %v3205_v58 }
 0x3a5   : > { %v3971_v55 = vpop.f32.mrf.mxu0 }
 0x3a6   : > { %3464 = vst.msk [vmem:[%s5783_s27 + $0x30] sm:$0xff] %vm3457_vm1, %v3971_v55 }
 0x3a7   : > { %v3218_v31 = vpop.f32.mrf.mxu0 }
 0x3a8   : > { %3462 = vst.msk [vmem:[%s5783_s27 + $0x20] sm:$0xff] %vm3457_vm1, %v3218_v31 }
 0x3a9   : > { %v3972_v2 = vpop.f32.mrf.mxu0 }
 0x3aa   : > { %3465 = vst.msk [vmem:[%s5783_s27 + $0x38] sm:$0xff] %vm3457_vm1, %v3972_v2 }
 0x3ab   : > { %v3221_v42 = vpop.f32.mrf.mxu0 }
 0x3ac   : > { %3463 = vst.msk [vmem:[%s5783_s27 + $0x28] sm:$0xff] %vm3457_vm1, %v3221_v42 }
 0x3ad   : > { %v3975_v61 = vpop.f32.mrf.mxu0 }
 0x3ae   : > { %3468 = vst.msk [vmem:[%s5783_s27 + $0x50] sm:$0xff] %vm3457_vm1, %v3975_v61 }
 0x3af   : > { %v3234_v18 = vpop.f32.mrf.mxu0 }
 0x3b0   : > { %3466 = vst.msk [vmem:[%s5783_s27 + $0x40] sm:$0xff] %vm3457_vm1, %v3234_v18 }
 0x3b1   : > { %v3976_v43 = vpop.f32.mrf.mxu0 }
 0x3b2   : > { %3469 = vst.msk [vmem:[%s5783_s27 + $0x58] sm:$0xff] %vm3457_vm1, %v3976_v43 }
 0x3b3   : > { %v3237_v11 = vpop.f32.mrf.mxu0 }
 0x3b4   : > { %3467 = vst.msk [vmem:[%s5783_s27 + $0x48] sm:$0xff] %vm3457_vm1, %v3237_v11 }
 0x3b5   : > { %v3979_v52 = vpop.f32.mrf.mxu0 }
 0x3b6   : > { %3472 = vst.msk [vmem:[%s5783_s27 + $0x70] sm:$0xff] %vm3457_vm1, %v3979_v52 }
 0x3b7   : > { %v3250_v4 = vpop.f32.mrf.mxu0 }
 0x3b8   : > { %3470 = vst.msk [vmem:[%s5783_s27 + $0x60] sm:$0xff] %vm3457_vm1, %v3250_v4 }
 0x3b9   : > { %v3980_v44 = vpop.f32.mrf.mxu0 }
 0x3ba   : > { %3473 = vst.msk [vmem:[%s5783_s27 + $0x78] sm:$0xff] %vm3457_vm1, %v3980_v44 }
 0x3bb   : > { %v3253_v33 = vpop.f32.mrf.mxu0 }
 0x3bc   : > { %3471 = vst.msk [vmem:[%s5783_s27 + $0x68] sm:$0xff] %vm3457_vm1, %v3253_v33 }
 0x3bd   : > { %v3983_v34 = vpop.f32.mrf.mxu0 }
 0x3be   : > { %3476 = vst.msk [vmem:[%s5783_s27 + $0x90] sm:$0xff] %vm3457_vm1, %v3983_v34 }
 0x3bf   : > { %v3266_v48 = vpop.f32.mrf.mxu0 }
 0x3c0   : > { %3474 = vst.msk [vmem:[%s5783_s27 + $0x80] sm:$0xff] %vm3457_vm1, %v3266_v48 }
 0x3c1   : > { %v3984_v19 = vpop.f32.mrf.mxu0 }
 0x3c2   : > { %3477 = vst.msk [vmem:[%s5783_s27 + $0x98] sm:$0xff] %vm3457_vm1, %v3984_v19 }
 0x3c3   : > { %v3269_v45 = vpop.f32.mrf.mxu0 }
 0x3c4   : > { %3475 = vst.msk [vmem:[%s5783_s27 + $0x88] sm:$0xff] %vm3457_vm1, %v3269_v45 }
 0x3c5   : > { %v3987_v17 = vpop.f32.mrf.mxu0 }
 0x3c6   : > { %3480 = vst.msk [vmem:[%s5783_s27 + $0xb0] sm:$0xff] %vm3457_vm1, %v3987_v17 }
 0x3c7   : > { %v3282_v56 = vpop.f32.mrf.mxu0 }
 0x3c8   : > { %3478 = vst.msk [vmem:[%s5783_s27 + $0xa0] sm:$0xff] %vm3457_vm1, %v3282_v56 }
 0x3c9   : > { %v3988_v6 = vpop.f32.mrf.mxu0 }
 0x3ca   : > { %3481 = vst.msk [vmem:[%s5783_s27 + $0xb8] sm:$0xff] %vm3457_vm1, %v3988_v6 }
 0x3cb   : > { %v3285_v47 = vpop.f32.mrf.mxu0 }
 0x3cc   : > { %3479 = vst.msk [vmem:[%s5783_s27 + $0xa8] sm:$0xff] %vm3457_vm1, %v3285_v47 }
 0x3cd   : > { %v3991_v50 = vpop.f32.mrf.mxu0 }
 0x3ce   : > { %3484 = vst.msk [vmem:[%s5783_s27 + $0xd0] sm:$0xff] %vm3457_vm1, %v3991_v50 }
 0x3cf   : > { %v3298_v13 = vpop.f32.mrf.mxu0 }
 0x3d0   : > { %3482 = vst.msk [vmem:[%s5783_s27 + $0xc0] sm:$0xff] %vm3457_vm1, %v3298_v13 }
 0x3d1   : > { %v3992_v60 = vpop.f32.mrf.mxu0 }
 0x3d2   : > { %3485 = vst.msk [vmem:[%s5783_s27 + $0xd8] sm:$0xff] %vm3457_vm1, %v3992_v60 }
 0x3d3   : > { %v3301_v20 = vpop.f32.mrf.mxu0 }
 0x3d4   : > { %3483 = vst.msk [vmem:[%s5783_s27 + $0xc8] sm:$0xff] %vm3457_vm1, %v3301_v20 }
 0x3d5   : > { %v3995_v57 = vpop.f32.mrf.mxu0 }
 0x3d6   : > { %3488 = vst.msk [vmem:[%s5783_s27 + $0xf0] sm:$0xff] %vm3457_vm1, %v3995_v57 }
 0x3d7   : > { %v3314_v8 = vpop.f32.mrf.mxu0 }
 0x3d8   : > { %3486 = vst.msk [vmem:[%s5783_s27 + $0xe0] sm:$0xff] %vm3457_vm1, %v3314_v8 }
 0x3d9   : > { %v3996_v16 = vpop.f32.mrf.mxu0 }
 0x3da   : > { %3489 = vst.msk [vmem:[%s5783_s27 + $0xf8] sm:$0xff] %vm3457_vm1, %v3996_v16 }
 0x3db   : > { %v3317_v24 = vpop.f32.mrf.mxu0 }
 0x3dc   : > { %3487 = vst.msk [vmem:[%s5783_s27 + $0xe8] sm:$0xff] %vm3457_vm1, %v3317_v24 }
 0x3dd   : > { %v3999_v54 = vpop.f32.mrf.mxu0 }
 0x3de   : > { %3492 = vst.msk [vmem:[%s5783_s27 + $0x110] sm:$0xff] %vm3457_vm1, %v3999_v54 }
 0x3df   : > { %v3330_v22 = vpop.f32.mrf.mxu0 }
 0x3e0   : > { %3490 = vst.msk [vmem:[%s5783_s27 + $0x100] sm:$0xff] %vm3457_vm1, %v3330_v22 }
 0x3e1   : > { %v4000_v5 = vpop.f32.mrf.mxu0 }
 0x3e2   : > { %3493 = vst.msk [vmem:[%s5783_s27 + $0x118] sm:$0xff] %vm3457_vm1, %v4000_v5 }
 0x3e3   : > { %v3333_v0 = vpop.f32.mrf.mxu0 }
 0x3e4   : > { %3491 = vst.msk [vmem:[%s5783_s27 + $0x108] sm:$0xff] %vm3457_vm1, %v3333_v0 }
 0x3e5   : > { %v4003_v21 = vpop.f32.mrf.mxu0 }
 0x3e6   : > { %3496 = vst.msk [vmem:[%s5783_s27 + $0x130] sm:$0xff] %vm3457_vm1, %v4003_v21 }
 0x3e7   : > { %v3346_v37 = vpop.f32.mrf.mxu0 }
 0x3e8   : > { %3494 = vst.msk [vmem:[%s5783_s27 + $0x120] sm:$0xff] %vm3457_vm1, %v3346_v37 }
 0x3e9   : > { %v4004_v62 = vpop.f32.mrf.mxu0 }
 0x3ea   : > { %3497 = vst.msk [vmem:[%s5783_s27 + $0x138] sm:$0xff] %vm3457_vm1, %v4004_v62 }
 0x3eb   : > { %v3349_v35 = vpop.f32.mrf.mxu0 }
 0x3ec   : > { %3495 = vst.msk [vmem:[%s5783_s27 + $0x128] sm:$0xff] %vm3457_vm1, %v3349_v35 }
 0x3f7   : > { %v4007_v41 = vpop.f32.mrf.mxu0 }
 0x3f8   : > { %3500 = vst.msk [vmem:[%s5783_s27 + $0x150] sm:$0xff] %vm3457_vm1, %v4007_v41 }
 0x3f9   : > { %v3362_v39 = vpop.f32.mrf.mxu0 }
 0x3fa   : > { %3498 = vst.msk [vmem:[%s5783_s27 + $0x140] sm:$0xff] %vm3457_vm1, %v3362_v39 }
 0x3fb   : > { %v4008_v23 = vpop.f32.mrf.mxu0 }
 0x3fc   : > { %3501 = vst.msk [vmem:[%s5783_s27 + $0x158] sm:$0xff] %vm3457_vm1, %v4008_v23 }
 0x3fd   : > { %v3365_v28 = vpop.f32.mrf.mxu0 }
 0x3fe   : > { %3499 = vst.msk [vmem:[%s5783_s27 + $0x148] sm:$0xff] %vm3457_vm1, %v3365_v28 }
 0x40a   : > { %v4011_v29 = vpop.f32.mrf.mxu0 }
 0x40b   : > { %3504 = vst.msk [vmem:[%s5783_s27 + $0x170] sm:$0xff] %vm3457_vm1, %v4011_v29 }
 0x40c   : > { %v3378_v7 = vpop.f32.mrf.mxu0 }
 0x40d   : > { %3502 = vst.msk [vmem:[%s5783_s27 + $0x160] sm:$0xff] %vm3457_vm1, %v3378_v7 }
 0x40e   : > { %v4012_v32 = vpop.f32.mrf.mxu0 }
 0x40f   : > { %3505 = vst.msk [vmem:[%s5783_s27 + $0x178] sm:$0xff] %vm3457_vm1, %v4012_v32 }
 0x410   : > { %v3381_v15 = vpop.f32.mrf.mxu0 }
 0x411   : > { %3503 = vst.msk [vmem:[%s5783_s27 + $0x168] sm:$0xff] %vm3457_vm1, %v3381_v15 }
 0x41d   : > { %v4015_v59 = vpop.f32.mrf.mxu0 }
 0x41e   : > { %3508 = vst.msk [vmem:[%s5783_s27 + $0x190] sm:$0xff] %vm3457_vm1, %v4015_v59 }
 0x41f   : > { %v3394_v51 = vpop.f32.mrf.mxu0 }
 0x420   : > { %3506 = vst.msk [vmem:[%s5783_s27 + $0x180] sm:$0xff] %vm3457_vm1, %v3394_v51 }
 0x421   : > { %v4016_v12 = vpop.f32.mrf.mxu0 }
 0x422   : > { %3509 = vst.msk [vmem:[%s5783_s27 + $0x198] sm:$0xff] %vm3457_vm1, %v4016_v12 }
 0x423   : > { %v3397_v26 = vpop.f32.mrf.mxu0 }
 0x424   : > { %3507 = vst.msk [vmem:[%s5783_s27 + $0x188] sm:$0xff] %vm3457_vm1, %v3397_v26 }
 0x430   : > { %v4019_v27 = vpop.f32.mrf.mxu0 }
 0x431   : > { %3512 = vst.msk [vmem:[%s5783_s27 + $0x1b0] sm:$0xff] %vm3457_vm1, %v4019_v27 }
 0x432   : > { %v3410_v40 = vpop.f32.mrf.mxu0 }
 0x433   : > { %3510 = vst.msk [vmem:[%s5783_s27 + $0x1a0] sm:$0xff] %vm3457_vm1, %v3410_v40 }
 0x434   : > { %v4020_v46 = vpop.f32.mrf.mxu0 }
 0x435   : > { %3513 = vst.msk [vmem:[%s5783_s27 + $0x1b8] sm:$0xff] %vm3457_vm1, %v4020_v46 }
 0x436   : > { %v3413_v14 = vpop.f32.mrf.mxu0 }
 0x437   : > { %3511 = vst.msk [vmem:[%s5783_s27 + $0x1a8] sm:$0xff] %vm3457_vm1, %v3413_v14 }
 0x448   : > { %v4023_v3 = vpop.f32.mrf.mxu0 }
 0x449   : > { %3516 = vst.msk [vmem:[%s5783_s27 + $0x1d0] sm:$0xff] %vm3457_vm1, %v4023_v3 }
 0x44a   : > { %v3426_v53 = vpop.f32.mrf.mxu0 }
 0x44b   : > { %3514 = vst.msk [vmem:[%s5783_s27 + $0x1c0] sm:$0xff] %vm3457_vm1, %v3426_v53 }
 0x44c   : > { %v4024_v38 = vpop.f32.mrf.mxu0 }
 0x44d   : > { %3517 = vst.msk [vmem:[%s5783_s27 + $0x1d8] sm:$0xff] %vm3457_vm1, %v4024_v38 }
 0x44e   : > { %v3429_v1 = vpop.f32.mrf.mxu0 }
 0x44f   : > { %3515 = vst.msk [vmem:[%s5783_s27 + $0x1c8] sm:$0xff] %vm3457_vm1, %v3429_v1 }
 0x461   : > { %v4027_v25 = vpop.f32.mrf.mxu0 }
 0x462   : > { %3520 = vst.msk [vmem:[%s5783_s27 + $0x1f0] sm:$0xff] %vm3457_vm1, %v4027_v25 }
 0x463   : > { %v3442_v49 = vpop.f32.mrf.mxu0 }
 0x464   : > { %3518 = vst.msk [vmem:[%s5783_s27 + $0x1e0] sm:$0xff] %vm3457_vm1, %v3442_v49 }
 0x465   : > { %v4028_v30 = vpop.f32.mrf.mxu0 }
 0x466   : > { %3521 = vst.msk [vmem:[%s5783_s27 + $0x1f8] sm:$0xff] %vm3457_vm1, %v4028_v30 }
 0x467   : > { %v3445_v63 = vpop.f32.mrf.mxu0 }
 0x468   : > { %3519 = vst.msk [vmem:[%s5783_s27 + $0x1e8] sm:$0xff] %vm3457_vm1, %v3445_v63 }
 0x469 PF: > { %s14_s15 = sadd.s32 1, %s4766_s15  }
 0x46a   : > { %p11_p4 = scmp.ge.s32.totalorder %s14_s15, 4  }
 0x46c   :  { %13 = sbr.rel (!%p11_p4) target bundleno = 1 (0x1), region = 67 }

</bundles_post_ra>
